<compile_context>
chip_gen: v7x
topology: tpu7x:2x2x1
jax: 0.10.0
libtpu: 0.0.40
codegen_flags: <defaults>
</compile_context>

<pallas_src>
import functools

import jax
import jax.numpy as jnp
from jax.experimental import pallas as pl
from jax.experimental.pallas import tpu as pltpu

D_IN = 1000                          # nn.Linear(1000, 512) input dim
H1 = 512
H2 = 64                              # logical width of the second hidden layer
H2_PAD = 128                         # lane-dense padded width used inside the kernel
PREDS = 1
OUT_DIM = (1 + PREDS) + 4 * PREDS    # sim_conf (2) + bb_regression (4) = 6
OUT_PAD = 128                        # lane-dense output slab width
TM_MAX = 1024                        # max patch rows per grid step
BN_EPS = 1e-5


def siamese_kernel(x_ref, obj_ref,
                   w1_ref, b1_ref,
                   w2_ref, b2_ref,
                   w3_ref, b3_ref,
                   out_ref):
    # |patch_feature - object_feature| in bf16 (MXU-native operand dtype);
    # the object row broadcasts over the TM patch rows.
    d = jnp.abs(x_ref[...] - obj_ref[...])                                  # (TM, 1000) bf16

    # Linear(1000->512) with eval-mode BatchNorm folded into w1/b1, then ReLU.
    h1 = jnp.dot(d, w1_ref[...], preferred_element_type=jnp.float32) + b1_ref[...]
    h1 = jnp.maximum(h1, 0.0)                                               # (TM, 512) f32

    # Linear(512->64) (zero-padded to 128 lanes) with folded BatchNorm, Sigmoid.
    # Padded columns carry sigmoid(0)=0.5 but hit all-zero rows of w3 below.
    h2 = jnp.dot(h1.astype(jnp.bfloat16), w2_ref[...],
                 preferred_element_type=jnp.float32) + b2_ref[...]
    h2 = jax.nn.sigmoid(h2)                                                 # (TM, 128) f32

    # Fused heads padded to 128 lanes: cols [0, 1+PREDS) sim_conf (sigmoid),
    # cols [1+PREDS, 6) bb_regression, cols [6, 128) zero padding.
    z = jnp.dot(h2.astype(jnp.bfloat16), w3_ref[...],
                preferred_element_type=jnp.float32) + b3_ref[...]           # (TM, 128) f32
    col = jax.lax.broadcasted_iota(jnp.int32, z.shape, 1)
    out_ref[...] = jnp.where(col < (1 + PREDS), jax.nn.sigmoid(z), z)


def init_params(key):
    ks = jax.random.split(key, 12)
    p = {}
    p["w1"] = jax.random.normal(ks[0], (D_IN, H1), jnp.float32) * 0.02
    p["b1"] = jax.random.normal(ks[1], (1, H1), jnp.float32) * 0.01
    p["bn1_gamma"] = 1.0 + 0.1 * jax.random.normal(ks[2], (1, H1), jnp.float32)
    p["bn1_beta"] = 0.1 * jax.random.normal(ks[3], (1, H1), jnp.float32)
    p["bn1_mean"] = 0.05 * jax.random.normal(ks[4], (1, H1), jnp.float32)
    p["bn1_var"] = 1.0 + 0.1 * jax.random.uniform(ks[5], (1, H1), jnp.float32)
    p["w2"] = jax.random.normal(ks[6], (H1, H2), jnp.float32) * 0.05
    p["b2"] = jax.random.normal(ks[7], (1, H2), jnp.float32) * 0.01
    p["bn2_gamma"] = 1.0 + 0.1 * jax.random.normal(ks[8], (1, H2), jnp.float32)
    p["bn2_beta"] = 0.1 * jax.random.normal(ks[9], (1, H2), jnp.float32)
    p["bn2_mean"] = 0.05 * jax.random.normal(ks[10], (1, H2), jnp.float32)
    p["bn2_var"] = 1.0 + 0.1 * jax.random.uniform(ks[11], (1, H2), jnp.float32)
    k_sim, k_bb = jax.random.split(jax.random.fold_in(key, 99), 2)
    p["w_sim"] = jax.random.normal(k_sim, (H2, 1 + PREDS), jnp.float32) * 0.1
    p["b_sim"] = jnp.zeros((1, 1 + PREDS), jnp.float32)
    p["w_bb"] = jax.random.normal(k_bb, (H2, 4 * PREDS), jnp.float32) * 0.1
    p["b_bb"] = jnp.zeros((1, 4 * PREDS), jnp.float32)
    return p


def prepare_params(p):
    """One-time prep (outside the per-call path): fold eval-mode BatchNorm into the
    linear weights, lane-pad layer 2, fuse + lane-pad the two heads, and cast MXU
    operands to bf16."""
    # (x @ w + b) * s + t  ==  x @ (w * s) + (b * s + t)   -- exact fold.
    s1 = p["bn1_gamma"] * jax.lax.rsqrt(p["bn1_var"] + BN_EPS)
    t1 = p["bn1_beta"] - p["bn1_mean"] * s1
    w1 = (p["w1"] * s1).astype(jnp.bfloat16)                  # (1000, 512) bf16
    b1 = (p["b1"] * s1 + t1).astype(jnp.float32)              # (1, 512)    f32

    s2 = p["bn2_gamma"] * jax.lax.rsqrt(p["bn2_var"] + BN_EPS)
    t2 = p["bn2_beta"] - p["bn2_mean"] * s2
    w2_f = p["w2"] * s2                                       # (512, 64)  BN-folded
    b2_f = p["b2"] * s2 + t2                                  # (1, 64)
    # Zero-pad layer 2 to 128 output lanes (lane-dense h2 vregs).
    w2 = jnp.zeros((H1, H2_PAD), jnp.float32).at[:, :H2].set(w2_f).astype(jnp.bfloat16)
    b2 = jnp.zeros((1, H2_PAD), jnp.float32).at[:, :H2].set(b2_f)

    # Fused heads, zero-padded to a lane-dense 128x128 matmul; padded h2 columns
    # (rows 64..127 here) are all-zero so they contribute nothing.
    w3 = jnp.zeros((H2_PAD, OUT_PAD), jnp.float32)
    w3 = w3.at[:H2, :1 + PREDS].set(p["w_sim"]).at[:H2, 1 + PREDS:OUT_DIM].set(p["w_bb"])
    b3 = jnp.zeros((1, OUT_PAD), jnp.float32)
    b3 = b3.at[:, :1 + PREDS].set(p["b_sim"]).at[:, 1 + PREDS:OUT_DIM].set(p["b_bb"])
    return dict(w1=w1, b1=b1, w2=w2, b2=b2,
                w3=w3.astype(jnp.bfloat16), b3=b3)


@functools.partial(jax.jit, static_argnums=(3, 4))
def siamese_forward(patch_feats, obj_feat, prep, num_w_boxes, num_h_boxes):
    """patch_feats: (N, 1000), ordered so patch i fills output[i % num_w, i // num_w]
    (the reference loop's fill order).  obj_feat: (1000,).  Returns (num_w, num_h, 6)."""
    n = patch_feats.shape[0]
    assert n == num_w_boxes * num_h_boxes

    x = patch_feats.astype(jnp.bfloat16)                       # (N, 1000) bf16
    obj = obj_feat.reshape(1, D_IN).astype(jnp.bfloat16)       # (1, 1000) bf16

    # Adaptive tile height: big enough to amortize per-step overhead, small enough
    # that tiny inputs don't pad/compute a full 1024-row tile.
    tm = min(TM_MAX, max(8, pl.cdiv(n, 8) * 8))
    n_pad = pl.cdiv(n, tm) * tm
    if n_pad != n:
        x = jnp.pad(x, ((0, n_pad - n), (0, 0)))               # padded rows discarded below

    res = lambda i: (0, 0)   # weights / biases: same block every step -> VMEM-resident
    out = pl.pallas_call(
        siamese_kernel,
        out_shape=jax.ShapeDtypeStruct((n_pad, OUT_PAD), jnp.float32),
        grid=(n_pad // tm,),
        in_specs=[
            pl.BlockSpec((tm, D_IN), lambda i: (i, 0)),        # x tile (pipelined)
            pl.BlockSpec((1, D_IN), res),                      # obj
            pl.BlockSpec((D_IN, H1), res),                     # w1 (BN-folded, bf16)
            pl.BlockSpec((1, H1), res),                        # b1
            pl.BlockSpec((H1, H2_PAD), res),                   # w2 (BN-folded, padded, bf16)
            pl.BlockSpec((1, H2_PAD), res),                    # b2
            pl.BlockSpec((H2_PAD, OUT_PAD), res),              # fused heads (bf16)
            pl.BlockSpec((1, OUT_PAD), res),                   # fused head bias
        ],
        out_specs=pl.BlockSpec((tm, OUT_PAD), lambda i: (i, 0)),
        compiler_params=pltpu.CompilerParams(
            # Patch tiles are independent -> shard across v7x's two TensorCores.
            dimension_semantics=("parallel",)),
    )(x, obj, prep["w1"], prep["b1"], prep["w2"], prep["b2"], prep["w3"], prep["b3"])

    out = out[:n, :OUT_DIM]
    # Reference fill order: patch i -> output[i % num_w, i // num_w, :].
    return out.reshape(num_h_boxes, num_w_boxes, OUT_DIM).transpose(1, 0, 2)


if __name__ == "__main__":
    key = jax.random.PRNGKey(0)
    k_params, k_img, k_obj = jax.random.split(key, 3)

    params = init_params(k_params)
    prep = prepare_params(params)   # one-time: BN fold, lane-pad, head fuse, bf16 cast

    num_w_boxes, num_h_boxes = 4, 4
    n_patches = num_w_boxes * num_h_boxes
    # Encoded (identity-encoder) features: one 1000-dim vector per 32x32 patch,
    # plus one 1000-dim vector for the query object.
    patch_feats = jax.random.normal(k_img, (n_patches, D_IN), jnp.float32)
    obj_feat = jax.random.normal(k_obj, (D_IN,), jnp.float32)

    out = siamese_forward(patch_feats, obj_feat, prep, num_w_boxes, num_h_boxes)
    out = jax.block_until_ready(out)
    assert out.shape == (num_w_boxes, num_h_boxes, OUT_DIM)
    assert bool(jnp.all(jnp.isfinite(out)))
    print("KERNEL_OK")
</pallas_src>

<mosaic_0001>
module attributes {stable_mosaic.version = 11 : i64} {
  func.func @siamese_kernel(%arg0: i32, %arg1: memref<16x1000xbf16, #tpu.memory_space<vmem>>, %arg2: memref<1x1000xbf16, #tpu.memory_space<vmem>>, %arg3: memref<1000x512xbf16, #tpu.memory_space<vmem>>, %arg4: memref<1x512xf32, #tpu.memory_space<vmem>>, %arg5: memref<512x128xbf16, #tpu.memory_space<vmem>>, %arg6: memref<1x128xf32, #tpu.memory_space<vmem>>, %arg7: memref<128x128xbf16, #tpu.memory_space<vmem>>, %arg8: memref<1x128xf32, #tpu.memory_space<vmem>>, %arg9: memref<16x128xf32, #tpu.memory_space<vmem>>) attributes {dimension_semantics = [#tpu.dimension_semantics<parallel>], iteration_bounds = array<i64: 1>, scalar_prefetch = 0 : i64, scratch_operands = 0 : i64, tpu.core_type = #tpu.core_type<tc>, window_params = [{transform_indices = @transform_0, window_bounds = array<i64: 16, 1000>}, {pipeline_mode = #tpu.pipeline_mode<synchronous>, transform_indices = @transform_1, window_bounds = array<i64: 1, 1000>}, {pipeline_mode = #tpu.pipeline_mode<synchronous>, transform_indices = @transform_2, window_bounds = array<i64: 1000, 512>}, {pipeline_mode = #tpu.pipeline_mode<synchronous>, transform_indices = @transform_3, window_bounds = array<i64: 1, 512>}, {pipeline_mode = #tpu.pipeline_mode<synchronous>, transform_indices = @transform_4, window_bounds = array<i64: 512, 128>}, {pipeline_mode = #tpu.pipeline_mode<synchronous>, transform_indices = @transform_5, window_bounds = array<i64: 1, 128>}, {pipeline_mode = #tpu.pipeline_mode<synchronous>, transform_indices = @transform_6, window_bounds = array<i64: 128, 128>}, {pipeline_mode = #tpu.pipeline_mode<synchronous>, transform_indices = @transform_7, window_bounds = array<i64: 1, 128>}, {transform_indices = @transform_8, window_bounds = array<i64: 16, 128>}]} {
    %c0 = arith.constant 0 : index
    %c0_0 = arith.constant 0 : index
    %0 = vector.load %arg1[%c0, %c0_0] : memref<16x1000xbf16, #tpu.memory_space<vmem>>, vector<16x1000xbf16>
    %c0_1 = arith.constant 0 : index
    %c0_2 = arith.constant 0 : index
    %1 = vector.load %arg2[%c0_1, %c0_2] : memref<1x1000xbf16, #tpu.memory_space<vmem>>, vector<1x1000xbf16>
    %2 = vector.broadcast %1 : vector<1x1000xbf16> to vector<16x1000xbf16>
    %3 = arith.subf %0, %2 : vector<16x1000xbf16>
    %4 = math.absf %3 : vector<16x1000xbf16>
    %c0_3 = arith.constant 0 : index
    %c0_4 = arith.constant 0 : index
    %5 = vector.load %arg3[%c0_3, %c0_4] : memref<1000x512xbf16, #tpu.memory_space<vmem>>, vector<1000x512xbf16>
    %cst = arith.constant dense<0.000000e+00> : vector<16x512xf32>
    %6 = tpu.matmul %4, %5, %cst {dimension_numbers = #tpu.dot_dimension_numbers<[1], [0], [0], [1], [0, 0, 1, 1], [], []>} : vector<16x1000xbf16>, vector<1000x512xbf16>, vector<16x512xf32> -> vector<16x512xf32>
    %c0_5 = arith.constant 0 : index
    %c0_6 = arith.constant 0 : index
    %7 = vector.load %arg4[%c0_5, %c0_6] : memref<1x512xf32, #tpu.memory_space<vmem>>, vector<1x512xf32>
    %8 = vector.broadcast %7 : vector<1x512xf32> to vector<16x512xf32>
    %9 = arith.addf %6, %8 : vector<16x512xf32>
    %cst_7 = arith.constant 0.000000e+00 : f32
    %10 = vector.broadcast %cst_7 : f32 to vector<16x512xf32>
    %11 = arith.maximumf %9, %10 : vector<16x512xf32>
    %12 = arith.truncf %11 : vector<16x512xf32> to vector<16x512xbf16>
    %c0_8 = arith.constant 0 : index
    %c0_9 = arith.constant 0 : index
    %13 = vector.load %arg5[%c0_8, %c0_9] : memref<512x128xbf16, #tpu.memory_space<vmem>>, vector<512x128xbf16>
    %cst_10 = arith.constant dense<0.000000e+00> : vector<16x128xf32>
    %14 = tpu.matmul %12, %13, %cst_10 {dimension_numbers = #tpu.dot_dimension_numbers<[1], [0], [0], [1], [0, 0, 1, 1], [], []>} : vector<16x512xbf16>, vector<512x128xbf16>, vector<16x128xf32> -> vector<16x128xf32>
    %c0_11 = arith.constant 0 : index
    %c0_12 = arith.constant 0 : index
    %15 = vector.load %arg6[%c0_11, %c0_12] : memref<1x128xf32, #tpu.memory_space<vmem>>, vector<1x128xf32>
    %16 = vector.broadcast %15 : vector<1x128xf32> to vector<16x128xf32>
    %17 = arith.addf %14, %16 : vector<16x128xf32>
    %18 = arith.negf %17 : vector<16x128xf32>
    %19 = math.exp %18 : vector<16x128xf32>
    %cst_13 = arith.constant 1.000000e+00 : f32
    %20 = vector.broadcast %cst_13 : f32 to vector<16x128xf32>
    %21 = arith.addf %20, %19 : vector<16x128xf32>
    %22 = arith.divf %20, %21 : vector<16x128xf32>
    %23 = arith.truncf %22 : vector<16x128xf32> to vector<16x128xbf16>
    %c0_14 = arith.constant 0 : index
    %c0_15 = arith.constant 0 : index
    %24 = vector.load %arg7[%c0_14, %c0_15] : memref<128x128xbf16, #tpu.memory_space<vmem>>, vector<128x128xbf16>
    %cst_16 = arith.constant dense<0.000000e+00> : vector<16x128xf32>
    %25 = tpu.matmul %23, %24, %cst_16 {dimension_numbers = #tpu.dot_dimension_numbers<[1], [0], [0], [1], [0, 0, 1, 1], [], []>} : vector<16x128xbf16>, vector<128x128xbf16>, vector<16x128xf32> -> vector<16x128xf32>
    %c0_17 = arith.constant 0 : index
    %c0_18 = arith.constant 0 : index
    %26 = vector.load %arg8[%c0_17, %c0_18] : memref<1x128xf32, #tpu.memory_space<vmem>>, vector<1x128xf32>
    %27 = vector.broadcast %26 : vector<1x128xf32> to vector<16x128xf32>
    %28 = arith.addf %25, %27 : vector<16x128xf32>
    %29 = tpu.iota {dimensions = array<i32: 1>} : vector<16x128xi32>
    %c2_i32 = arith.constant 2 : i32
    %30 = vector.broadcast %c2_i32 : i32 to vector<16x128xi32>
    %31 = arith.cmpi slt, %29, %30 : vector<16x128xi32>
    %32 = arith.negf %28 : vector<16x128xf32>
    %33 = math.exp %32 : vector<16x128xf32>
    %cst_19 = arith.constant 1.000000e+00 : f32
    %34 = vector.broadcast %cst_19 : f32 to vector<16x128xf32>
    %35 = arith.addf %34, %33 : vector<16x128xf32>
    %36 = arith.divf %34, %35 : vector<16x128xf32>
    %37 = arith.select %31, %36, %28 : vector<16x128xi1>, vector<16x128xf32>
    %c0_20 = arith.constant 0 : index
    %c0_21 = arith.constant 0 : index
    %38 = vector.load %arg9[%c0_20, %c0_21] : memref<16x128xf32, #tpu.memory_space<vmem>>, vector<16x128xf32>
    tpu.vector_store %arg9[%c0_20, %c0_21], %37 {strides = array<i32>} : memref<16x128xf32, #tpu.memory_space<vmem>>, vector<16x128xf32>,
    return
  }
  func.func @transform_0(%arg0: i32) -> (i32, i32) {
    %c0_i32 = arith.constant 0 : i32
    %c0_i32_0 = arith.constant 0 : i32
    return %arg0, %c0_i32 : i32, i32
  }
  func.func @transform_1(%arg0: i32) -> (i32, i32) {
    %c0_i32 = arith.constant 0 : i32
    %c0_i32_0 = arith.constant 0 : i32
    %c0_i32_1 = arith.constant 0 : i32
    return %c0_i32, %c0_i32_0 : i32, i32
  }
  func.func @transform_2(%arg0: i32) -> (i32, i32) {
    %c0_i32 = arith.constant 0 : i32
    %c0_i32_0 = arith.constant 0 : i32
    %c0_i32_1 = arith.constant 0 : i32
    return %c0_i32, %c0_i32_0 : i32, i32
  }
  func.func @transform_3(%arg0: i32) -> (i32, i32) {
    %c0_i32 = arith.constant 0 : i32
    %c0_i32_0 = arith.constant 0 : i32
    %c0_i32_1 = arith.constant 0 : i32
    return %c0_i32, %c0_i32_0 : i32, i32
  }
  func.func @transform_4(%arg0: i32) -> (i32, i32) {
    %c0_i32 = arith.constant 0 : i32
    %c0_i32_0 = arith.constant 0 : i32
    %c0_i32_1 = arith.constant 0 : i32
    return %c0_i32, %c0_i32_0 : i32, i32
  }
  func.func @transform_5(%arg0: i32) -> (i32, i32) {
    %c0_i32 = arith.constant 0 : i32
    %c0_i32_0 = arith.constant 0 : i32
    %c0_i32_1 = arith.constant 0 : i32
    return %c0_i32, %c0_i32_0 : i32, i32
  }
  func.func @transform_6(%arg0: i32) -> (i32, i32) {
    %c0_i32 = arith.constant 0 : i32
    %c0_i32_0 = arith.constant 0 : i32
    %c0_i32_1 = arith.constant 0 : i32
    return %c0_i32, %c0_i32_0 : i32, i32
  }
  func.func @transform_7(%arg0: i32) -> (i32, i32) {
    %c0_i32 = arith.constant 0 : i32
    %c0_i32_0 = arith.constant 0 : i32
    %c0_i32_1 = arith.constant 0 : i32
    return %c0_i32, %c0_i32_0 : i32, i32
  }
  func.func @transform_8(%arg0: i32) -> (i32, i32) {
    %c0_i32 = arith.constant 0 : i32
    %c0_i32_0 = arith.constant 0 : i32
    return %arg0, %c0_i32 : i32, i32
  }
}

</mosaic_0001>

<bundles_post_ra>
// kernel: siamese_forward.1
= control target key start
LH: loop header
LB: loop body
LE: loop exit
PB: predicated region body
PF: predicated region fallthrough
CT: control target
= control target key end

     0   :  { %13 = vsyncpa [#allocation3], 0  ;;  %s3773_s0 = inlined_call_operand.vmem [shape: bf16[16,1000], index: 0, kind: input, shape index: {}]   ;;  %s3774_s1 = inlined_call_operand.vmem [shape: bf16[1,1000], index: 1, kind: input, shape index: {}]   ;;  %s3775_s2 = inlined_call_operand.hbm [shape: bf16[1000,512], index: 2, kind: input, shape index: {}]   ;;  %s3776_s3 = inlined_call_operand.vmem [shape: f32[1,512], index: 3, kind: input, shape index: {}]   ;;  %s3777_s4 = inlined_call_operand.hbm [shape: bf16[512,128], index: 4, kind: input, shape index: {}]   ;;  %s3778_s5 = inlined_call_operand.vmem [shape: f32[1,128], index: 5, kind: input, shape index: {}]   ;;  %s3779_s6 = inlined_call_operand.vmem [shape: bf16[128,128], index: 6, kind: input, shape index: {}]   ;;  %s3780_s7 = inlined_call_operand.vmem [shape: f32[1,128], index: 7, kind: input, shape index: {}]   ;;  %s3781_s8 = inlined_call_operand.vmem [shape: f32[16,128], index: 8, kind: output, shape index: {}]  }
   0x1   :  { %14 = vsyncpa [#allocation5], 0  ;;  %s3551_s27 = smov [#allocation2]   ;;  %s3503_s9 = scalar_lea.hbm %s3775_s2, 32000 }
   0x2   :  { %s24_s28 = sshll.u32 %s3551_s27, 4  ;;  %p3504_p0 = scmp.ne.s32.totalorder %s3775_s2, %s3503_s9  ;;  %s25_s28 = int_to_ptr.vmem [resolvable:$true] %s24_s28 }
   0x3   :  { %p3507_p1 = scmp.lt.u32.totalorder %s3503_s9, %s3775_s2 }
   0x5   :  { %p3509_p2 = pnand %p3507_p1, %p3504_p0 }
   0x7   :  { %3512 = shalt.err (!%p3509_p2)
}
   0x8   :  { %s3513_s14 = scalar_lea.vmem %s25_s28, 32000  ;;  %p3518_p4 = scmp.lt.s32.totalorder %s25_s28, %s25_s28 }
   0x9   :  { %p3514_p3 = scmp.ne.s32.totalorder %s25_s28, %s3513_s14  ;;  %p3519_p5 = scmp.lt.s32.totalorder %s3513_s14, %s3513_s14 }
   0xb   :  { %p3520_p6 = por %p3519_p5, %p3518_p4 }
   0xd   :  { %p3521_p7 = pnand %p3520_p6, %p3514_p3 }
   0xf   :  { %3524 = shalt.err (!%p3521_p7)
}
  0x10   :  { %s3552_s15 = smov 256   ;;  %s3553_s16 = smov 16  }
  0x11   :  { %30 = dma.hbm_to_vmem [thread:$0]  %s3775_s2, 32000, %s25_s28, [#allocation3], %s3552_s15, %s3552_s15, %s3553_s16  }
  0x12   :  { %s3554_s19 = smov [#allocation4]   ;;  %s3525_s23 = scalar_lea.hbm %s3777_s4, 4096 }
  0x13   :  { %s38_s20 = sshll.u32 %s3554_s19, 4  ;;  %p3526_p8 = scmp.ne.s32.totalorder %s3777_s4, %s3525_s23  ;;  %s39_s20 = int_to_ptr.vmem [resolvable:$true] %s38_s20 }
  0x14   :  { %p3529_p9 = scmp.lt.u32.totalorder %s3525_s23, %s3777_s4 }
  0x16   :  { %p3531_p10 = pnand %p3529_p9, %p3526_p8 }
  0x18   :  { %3534 = shalt.err (!%p3531_p10)
}
  0x19   :  { %s3535_s29 = scalar_lea.vmem %s39_s20, 4096  ;;  %p3540_p12 = scmp.lt.s32.totalorder %s39_s20, %s39_s20 }
  0x1a   :  { %p3536_p11 = scmp.ne.s32.totalorder %s39_s20, %s3535_s29  ;;  %p3541_p13 = scmp.lt.s32.totalorder %s3535_s29, %s3535_s29 }
  0x1c   :  { %p3542_p0 = por %p3541_p13, %p3540_p12 }
  0x1e   :  { %p3543_p1 = pnand %p3542_p0, %p3536_p11 }
  0x20   :  { %3546 = shalt.err (!%p3543_p1)
}
  0x21   :  { %s3555_s2 = smov 64   ;;  %s3556_s28 = smov 4  }
  0x22   :  { %44 = dma.hbm_to_vmem [thread:$0]  %s3777_s4, 4096, %s39_s20, [#allocation5], %s3555_s2, %s3555_s2, %s3556_s28  }
  0x23   :  { %3547 = dma.done.wait [#allocation3], 32000  }
  0x24   :  { %3548 = vsyncadd [#allocation3], 4294935296 }
  0x25   :  { %3549 = dma.done.wait [#allocation5], 4096  }
  0x26   :  { %3550 = vsyncadd [#allocation5], 4294963200  ;;  %v3070_v0 = vld [vmem:[#allocation2 + $0x4] ss:$16 sps:$4 sm:$0xff]   ;;  %v3072_v1 = vld [vmem:[#allocation2 + $0xc] ss:$16 sps:$4 sm:$0xff]   ;;  %v72_v39 = vlaneseq }
  0x27   :  { %1791 = vmatprep.subr.bf16.mxu0 %v3070_v0  ;;  %v3074_v2 = vld [vmem:[#allocation2] ss:$16 sps:$4 sm:$0xff]   ;;  %v3075_v3 = vld [vmem:[#allocation2 + $0x8] ss:$16 sps:$4 sm:$0xff]   ;;  %1963 = vmatprep.subr.bf16.mxu1 %v3072_v1  ;;  %v3076_v4 = vld [vmem:[#allocation2 + $0x24] ss:$16 sps:$4 sm:$0xff]  }
  0x28   :  { %1792 = vmatpush1.bf16.msra.mxu0 %v3074_v2  ;;  %1964 = vmatpush1.bf16.msra.mxu1 %v3075_v3  ;;  %v3078_v5 = vld [vmem:[#allocation2 + $0x2c] ss:$16 sps:$4 sm:$0xff]   ;;  %v3080_v6 = vld [vmem:[#allocation2 + $0x20] ss:$16 sps:$4 sm:$0xff]   ;;  %v3081_v7 = vld [vmem:[#allocation2 + $0x28] ss:$16 sps:$4 sm:$0xff]  }
  0x29   :  { %1793 = vmatprep.subr.bf16.mxu0 %v3076_v4  ;;  %1965 = vmatprep.subr.bf16.mxu1 %v3078_v5  ;;  %v3082_v8 = vld [vmem:[#allocation2 + $0x44] ss:$16 sps:$4 sm:$0xff]   ;;  %v3084_v9 = vld [vmem:[#allocation2 + $0x4c] ss:$16 sps:$4 sm:$0xff]   ;;  %v3086_v10 = vld [vmem:[#allocation2 + $0x40] ss:$16 sps:$4 sm:$0xff]  }
  0x2a   :  { %v3087_v11 = vld [vmem:[#allocation2 + $0x48] ss:$16 sps:$4 sm:$0xff]   ;;  %v3088_v12 = vld [vmem:[#allocation2 + $0x64] ss:$16 sps:$4 sm:$0xff]   ;;  %v3090_v13 = vld [vmem:[#allocation2 + $0x6c] ss:$16 sps:$4 sm:$0xff]  }
  0x2b   :  { %v3092_v14 = vld [vmem:[#allocation2 + $0x60] ss:$16 sps:$4 sm:$0xff]   ;;  %v3093_v15 = vld [vmem:[#allocation2 + $0x68] ss:$16 sps:$4 sm:$0xff]   ;;  %v3094_v16 = vld [vmem:[#allocation2 + $0x84] ss:$16 sps:$4 sm:$0xff]  }
  0x2c   :  { %1794 = vmatpush1.bf16.msra.mxu0 %v3080_v6  ;;  %1966 = vmatpush1.bf16.msra.mxu1 %v3081_v7  ;;  %v3096_v17 = vld [vmem:[#allocation2 + $0x8c] ss:$16 sps:$4 sm:$0xff]   ;;  %v3098_v18 = vld [vmem:[#allocation2 + $0x80] ss:$16 sps:$4 sm:$0xff]   ;;  %v3099_v19 = vld [vmem:[#allocation2 + $0x88] ss:$16 sps:$4 sm:$0xff]  }
  0x2d   :  { %1795 = vmatprep.subr.bf16.mxu0 %v3082_v8  ;;  %1967 = vmatprep.subr.bf16.mxu1 %v3084_v9  ;;  %v3100_v20 = vld [vmem:[#allocation2 + $0xa4] ss:$16 sps:$4 sm:$0xff]   ;;  %v3102_v21 = vld [vmem:[#allocation2 + $0xac] ss:$16 sps:$4 sm:$0xff]   ;;  %v3104_v22 = vld [vmem:[#allocation2 + $0xa0] ss:$16 sps:$4 sm:$0xff]  }
  0x2e   :  { %v3105_v23 = vld [vmem:[#allocation2 + $0xa8] ss:$16 sps:$4 sm:$0xff]   ;;  %v3106_v24 = vld [vmem:[#allocation2 + $0xc4] ss:$16 sps:$4 sm:$0xff]   ;;  %v3108_v25 = vld [vmem:[#allocation2 + $0xcc] ss:$16 sps:$4 sm:$0xff]  }
  0x2f   :  { %v3110_v26 = vld [vmem:[#allocation2 + $0xc0] ss:$16 sps:$4 sm:$0xff]   ;;  %v3111_v27 = vld [vmem:[#allocation2 + $0xc8] ss:$16 sps:$4 sm:$0xff]   ;;  %v3112_v28 = vld [vmem:[#allocation2 + $0xe4] ss:$16 sps:$4 sm:$0xff]  }
  0x30   :  { %1796 = vmatpush1.bf16.msra.mxu0 %v3086_v10  ;;  %1968 = vmatpush1.bf16.msra.mxu1 %v3087_v11  ;;  %v3114_v29 = vld [vmem:[#allocation2 + $0xec] ss:$16 sps:$4 sm:$0xff]   ;;  %v3116_v30 = vld [vmem:[#allocation2 + $0xe0] ss:$16 sps:$4 sm:$0xff]   ;;  %v3117_v31 = vld [vmem:[#allocation2 + $0xe8] ss:$16 sps:$4 sm:$0xff]  }
  0x31   :  { %1797 = vmatprep.subr.bf16.mxu0 %v3088_v12  ;;  %1969 = vmatprep.subr.bf16.mxu1 %v3090_v13  ;;  %v3118_v32 = vld [vmem:[#allocation2 + $0x104] ss:$16 sps:$4 sm:$0xff]   ;;  %v3120_v33 = vld [vmem:[#allocation2 + $0x10c] ss:$16 sps:$4 sm:$0xff]   ;;  %v3122_v34 = vld [vmem:[#allocation2 + $0x100] ss:$16 sps:$4 sm:$0xff]  }
  0x32   :  { %v3123_v35 = vld [vmem:[#allocation2 + $0x108] ss:$16 sps:$4 sm:$0xff]   ;;  %v3124_v36 = vld [vmem:[#allocation2 + $0x124] ss:$16 sps:$4 sm:$0xff]   ;;  %v3557_v37 = vmov 1966171168  }
  0x33   :  { %v70_v38 = vunpack.c.l.s4 %v3557_v37  ;;  %v3126_v40 = vld [vmem:[#allocation2 + $0x12c] ss:$16 sps:$4 sm:$0xff]   ;;  %v3128_v41 = vld [vmem:[#allocation2 + $0x120] ss:$16 sps:$4 sm:$0xff]   ;;  %v3129_v42 = vld [vmem:[#allocation2 + $0x128] ss:$16 sps:$4 sm:$0xff]  }
  0x34   :  { %1798 = vmatpush1.bf16.msra.mxu0 %v3092_v14  ;;  %1970 = vmatpush1.bf16.msra.mxu1 %v3093_v15  ;;  %v3130_v43 = vld [vmem:[#allocation2 + $0x144] ss:$16 sps:$4 sm:$0xff]   ;;  %v3630_v45 = vshrl.u32 %v72_v39, 7  ;;  %v3132_v46 = vld [vmem:[#allocation2 + $0x14c] ss:$16 sps:$4 sm:$0xff]   ;;  %vm1774_vm0 = vcmask 850944  }
  0x35   :  { %1799 = vmatprep.subr.bf16.mxu0 %v3094_v16  ;;  %1971 = vmatprep.subr.bf16.mxu1 %v3096_v17  ;;  %v71_v44 = vunpack.c.0.s8 %v70_v38  ;;  %v3134_v47 = vld [vmem:[#allocation2 + $0x140] ss:$16 sps:$4 sm:$0xff]   ;;  %v3135_v48 = vld [vmem:[#allocation2 + $0x148] ss:$16 sps:$4 sm:$0xff]   ;;  %v3136_v49 = vld [vmem:[#allocation2 + $0x164] ss:$16 sps:$4 sm:$0xff]  }
  0x36   :  { %v3138_v51 = vld [vmem:[#allocation2 + $0x16c] ss:$16 sps:$4 sm:$0xff]   ;;  %v3140_v52 = vld [vmem:[#allocation2 + $0x160] ss:$16 sps:$4 sm:$0xff]   ;;  %v3141_v54 = vld [vmem:[#allocation2 + $0x168] ss:$16 sps:$4 sm:$0xff]  }
  0x37   :  { %v74_v50 = vsub.s32 %v71_v44, %v3630_v45  ;;  %v66_v53 = vld [vmem:[%s3774_s1] sm:$0xff]  ;;  %v3144_v57 = vld [vmem:[#allocation2 + $0x18c] ss:$16 sps:$4 sm:$0xff]   ;;  %v3639_v61 = vsub.s32 0, %v3630_v45  ;;  %v3147_v63 = vld [vmem:[#allocation2 + $0x188] ss:$16 sps:$4 sm:$0xff]  }
  0x38   :  { %1800 = vmatpush1.bf16.msra.mxu0 %v3098_v18  ;;  %1972 = vmatpush1.bf16.msra.mxu1 %v3099_v19  ;;  %v3142_v55 = vld [vmem:[#allocation2 + $0x184] ss:$16 sps:$4 sm:$0xff]   ;;  %v68_v58 = vcombine.high %v66_v53, %v66_v53  ;;  %v3146_v62 = vld [vmem:[#allocation2 + $0x180] ss:$16 sps:$4 sm:$0xff]   ;;  %v3150_v3 = vld [vmem:[#allocation2 + $0x1ac] ss:$16 sps:$4 sm:$0xff]  }
  0x39   :  { %1801 = vmatprep.subr.bf16.mxu0 %v3100_v20  ;;  %1973 = vmatprep.subr.bf16.mxu1 %v3102_v21  ;;  %v75_v56 = vrot.slane %v66_v53, %v74_v50  ;;  %v3148_v0 = vld [vmem:[#allocation2 + $0x1a4] ss:$16 sps:$4 sm:$0xff]   ;;  %v3152_v5 = vld [vmem:[#allocation2 + $0x1a0] ss:$16 sps:$4 sm:$0xff]   ;;  %v3153_v8 = vld [vmem:[#allocation2 + $0x1a8] ss:$16 sps:$4 sm:$0xff]  }
  0x3a   :  { %v82_v4 = vrot.slane %v68_v58, %v74_v50  ;;  %v3154_v9 = vld [vmem:[#allocation2 + $0x1c4] ss:$16 sps:$4 sm:$0xff]   ;;  %v3156_v11 = vld [vmem:[#allocation2 + $0x1cc] ss:$16 sps:$4 sm:$0xff]   ;;  %v3158_v18 = vld [vmem:[#allocation2 + $0x1c0] ss:$16 sps:$4 sm:$0xff]  }
  0x3b   :  { %v83_v59 = vcombine.high %v75_v56, %v75_v56  ;;  %v3636_v60 = vrot.slane %v75_v56, %v74_v50  ;;  %v58_v12 = vld [vmem:[%s3773_s0] sm:$0xff]  ;;  %v3159_v21 = vld [vmem:[#allocation2 + $0x1c8] ss:$16 sps:$4 sm:$0xff]   ;;  %v3196_v58 = vld [vmem:[#allocation2 + $0x28c] ss:$16 sps:$4 sm:$0xff]   ;;  %vm1778_vm1 = vcmask 1043456  }
  0x3c   :  { %1802 = vmatpush1.bf16.msra.mxu0 %v3104_v22  ;;  %1974 = vmatpush1.bf16.msra.mxu1 %v3105_v23  ;;  %v84_v10 = vcombine.high %v82_v4, %v82_v4  ;;  %v62_v14 = vld [vmem:[%s3773_s0 + $0x20] sm:$0xff]  ;;  %v3655_v15 = vrot.slane %v82_v4, %v74_v50  ;;  %v3170_v38 = vld [vmem:[#allocation2 + $0x208] ss:$16 sps:$4 sm:$0xff]   ;;  %vm3559_vm2 = vmmov 0  }
  0x3d   :  { %1803 = vmatprep.subr.bf16.mxu0 %v3106_v24  ;;  %1975 = vmatprep.subr.bf16.mxu1 %v3108_v25  ;;  %v3641_v1 = vrot.slane %v83_v59, %v74_v50  ;;  %v118_v2 = vpack.i.b16 %v3636_v60, %v3636_v60  ;;  %v3160_v22 = vld [vmem:[#allocation2 + $0x1e4] ss:$16 sps:$4 sm:$0xff]   ;;  %v3162_v25 = vld [vmem:[#allocation2 + $0x1ec] ss:$16 sps:$4 sm:$0xff]   ;;  %v3185_v53 = vld [vmem:[#allocation2 + $0x260] ss:$16 sps:$4 sm:$0xff]  }
  0x3e   :  { %v3657_v16 = vrot.slane %v84_v10, %v74_v50  ;;  %v146_v19 = vpack.i.b16 %v3655_v15, %v3655_v15  ;;  %v3181_v44 = vld [vmem:[#allocation2 + $0x244] ss:$16 sps:$4 sm:$0xff]   ;;  %v3191_v59 = vld [vmem:[#allocation2 + $0x280] ss:$16 sps:$4 sm:$0xff]   ;;  %v3206_v10 = vld [vmem:[#allocation2 + $0x2c8] ss:$16 sps:$4 sm:$0xff]  }
  0x3f   :  { %v123_v6 = vrot.slane %v118_v2, %v3639_v61  ;;  %v125_v7 = vpack.i.b16 %v3641_v1, %v3641_v1  ;;  %v115_v50 = vcombine.high %v3641_v1, %v3641_v1  ;;  %v3202_v1 = vld [vmem:[#allocation2 + $0x2ac] ss:$16 sps:$4 sm:$0xff]   ;;  %v3197_v2 = vld [vmem:[#allocation2 + $0x2a0] ss:$16 sps:$4 sm:$0xff]  }
  0x40   :  { %1804 = vmatpush1.bf16.msra.mxu0 %v3110_v26  ;;  %1976 = vmatpush1.bf16.msra.mxu1 %v3111_v27  ;;  %v153_v20 = vpack.i.b16 %v3657_v16, %v3657_v16  ;;  %v151_v26 = vrot.slane %v146_v19, %v3639_v61  ;;  %v3209_v19 = vld [vmem:[#allocation2 + $0x2e0] ss:$16 sps:$4 sm:$0xff]  }
  0x41   :  { %1805 = vmatprep.subr.bf16.mxu0 %v3112_v28  ;;  %1977 = vmatprep.subr.bf16.mxu1 %v3114_v29  ;;  %v130_v13 = vrot.slane %v125_v7, %v3639_v61  ;;  %v139_v56 = vpack.i.b16 %v115_v50, %v115_v50  ;;  %v3203_v7 = vld [vmem:[#allocation2 + $0x2c0] ss:$16 sps:$4 sm:$0xff]  }
  0x42   :  { %v158_v27 = vrot.slane %v153_v20, %v3639_v61  ;;  %v3212_v20 = vld [vmem:[#allocation2 + $0x2e8] ss:$16 sps:$4 sm:$0xff]  }
  0x43   :  { %v2642_v17 = vcombine.low %v123_v6, %v130_v13  ;;  %v3208_v6 = vld [vmem:[#allocation2 + $0x2cc] ss:$16 sps:$4 sm:$0xff]  }
  0x44   :  { %1806 = vmatpush1.bf16.msra.mxu0 %v3116_v30  ;;  %1978 = vmatpush1.bf16.msra.mxu1 %v3117_v31  ;;  %v3164_v30 = vld [vmem:[#allocation2 + $0x1e0] ss:$16 sps:$4 sm:$0xff]   ;;  %v3665_v31 = vcombine.low %v151_v26, %v158_v27  ;;  %v3223_v26 = vld [vmem:[#allocation2 + $0x324] ss:$16 sps:$4 sm:$0xff]   ;;  %v3226_v27 = vld [vmem:[#allocation2 + $0x32c] ss:$16 sps:$4 sm:$0xff]  }
  0x45   :  { %1807 = vmatprep.subr.bf16.mxu0 %v3118_v32  ;;  %1979 = vmatprep.subr.bf16.mxu1 %v3120_v33  ;;  %v197_v23 = vsub.bf16 %v58_v12, %v2642_v17  ;;  %v201_v24 = vsub.bf16 %v62_v14, %v2642_v17  ;;  %v3165_v32 = vld [vmem:[#allocation2 + $0x1e8] ss:$16 sps:$4 sm:$0xff]   ;;  %v3214_v14 = vld [vmem:[#allocation2 + $0x2ec] ss:$16 sps:$4 sm:$0xff]  }
  0x47   :  { %v205_v28 = vand.u32 2147450879, %v197_v23  ;;  %v209_v29 = vand.u32 2147450879, %v201_v24  ;;  %v3220_v23 = vld [vmem:[#allocation2 + $0x30c] ss:$16 sps:$4 sm:$0xff]  }
  0x48   :  { %1808 = vmatpush1.bf16.msra.mxu0 %v3122_v34  ;;  %1980 = vmatpush1.bf16.msra.mxu1 %v3123_v35  ;;  %v3169_v34 = vld [vmem:[#allocation2 + $0x204] ss:$16 sps:$4 sm:$0xff]   ;;  %v3172_v35 = vld [vmem:[#allocation2 + $0x20c] ss:$16 sps:$4 sm:$0xff]   ;;  %v3215_v24 = vld [vmem:[#allocation2 + $0x300] ss:$16 sps:$4 sm:$0xff]  }
  0x49   :  { %1809 = vmatprep.subr.bf16.mxu0 %v3124_v36  ;;  %1981 = vmatprep.subr.bf16.mxu1 %v3126_v40  ;;  %v2647_v33 = vcombine.high %v205_v28, %v209_v29  ;;  %v3167_v36 = vld [vmem:[#allocation2 + $0x200] ss:$16 sps:$4 sm:$0xff]   ;;  %v2646_v37 = vcombine.low %v205_v28, %v209_v29  ;;  %v3175_v40 = vld [vmem:[#allocation2 + $0x224] ss:$16 sps:$4 sm:$0xff]   ;;  %v3224_v29 = vld [vmem:[#allocation2 + $0x328] ss:$16 sps:$4 sm:$0xff]  }
  0x4a   :  { %v3221_v28 = vld [vmem:[#allocation2 + $0x320] ss:$16 sps:$4 sm:$0xff]  }
  0x4b   :  { %1823 = vmatprep.mubr.bf16.mxu0 %v2647_v33  ;;  %1995 = vmatprep.mubr.bf16.mxu1 %v2647_v33  ;;  %v3227_v33 = vld [vmem:[#allocation2 + $0x340] ss:$16 sps:$4 sm:$0xff]  }
  0x4c   :  { %1810 = vmatpush1.bf16.msra.mxu0 %v3128_v41  ;;  %1982 = vmatpush1.bf16.msra.mxu1 %v3129_v42  ;;  %v3178_v41 = vld [vmem:[#allocation2 + $0x22c] ss:$16 sps:$4 sm:$0xff]   ;;  %v3173_v42 = vld [vmem:[#allocation2 + $0x220] ss:$16 sps:$4 sm:$0xff]  }
  0x4d   :  { %1811 = vmatprep.subr.bf16.mxu0 %v3130_v43  ;;  %1983 = vmatprep.subr.bf16.mxu1 %v3132_v46  ;;  %v3176_v43 = vld [vmem:[#allocation2 + $0x228] ss:$16 sps:$4 sm:$0xff]   ;;  %v3184_v46 = vld [vmem:[#allocation2 + $0x24c] ss:$16 sps:$4 sm:$0xff]  }
  0x50   :  { %1812 = vmatpush1.bf16.msra.mxu0 %v3134_v47  ;;  %1984 = vmatpush1.bf16.msra.mxu1 %v3135_v48  ;;  %v3179_v47 = vld [vmem:[#allocation2 + $0x240] ss:$16 sps:$4 sm:$0xff]   ;;  %v3182_v48 = vld [vmem:[#allocation2 + $0x248] ss:$16 sps:$4 sm:$0xff]  }
  0x51   :  { %1813 = vmatprep.subr.bf16.mxu0 %v3136_v49  ;;  %1985 = vmatprep.subr.bf16.mxu1 %v3138_v51  ;;  %v113_v49 = vcombine.high %v3636_v60, %v3636_v60  ;;  %v3187_v51 = vld [vmem:[#allocation2 + $0x264] ss:$16 sps:$4 sm:$0xff]   ;;  %v3194_v60 = vld [vmem:[#allocation2 + $0x288] ss:$16 sps:$4 sm:$0xff]  }
  0x54   :  { %1814 = vmatpush1.bf16.msra.mxu0 %v3140_v52  ;;  %1986 = vmatpush1.bf16.msra.mxu1 %v3141_v54  ;;  %v3190_v52 = vld [vmem:[#allocation2 + $0x26c] ss:$16 sps:$4 sm:$0xff]   ;;  %v3188_v54 = vld [vmem:[#allocation2 + $0x268] ss:$16 sps:$4 sm:$0xff]  }
  0x55   :  { %1815 = vmatprep.subr.bf16.mxu0 %v3142_v55  ;;  %1987 = vmatprep.subr.bf16.mxu1 %v3144_v57  ;;  %v132_v55 = vpack.i.b16 %v113_v49, %v113_v49  ;;  %v3193_v57 = vld [vmem:[#allocation2 + $0x284] ss:$16 sps:$4 sm:$0xff]  }
  0x58   :  { %1816 = vmatpush1.bf16.msra.mxu0 %v3146_v62  ;;  %1988 = vmatpush1.bf16.msra.mxu1 %v3147_v63  ;;  %v137_v62 = vrot.slane %v132_v55, %v3639_v61  ;;  %v144_v63 = vrot.slane %v139_v56, %v3639_v61  ;;  %v3256_v55 = vld [vmem:[#allocation2 + $0x3cc] ss:$16 sps:$4 sm:$0xff]  }
  0x59   :  { %1817 = vmatprep.subr.bf16.mxu0 %v3148_v0  ;;  %1989 = vmatprep.subr.bf16.mxu1 %v3150_v3  ;;  %v3199_v0 = vld [vmem:[#allocation2 + $0x2a4] ss:$16 sps:$4 sm:$0xff]   ;;  %v3200_v3 = vld [vmem:[#allocation2 + $0x2a8] ss:$16 sps:$4 sm:$0xff]  }
  0x5a   :  { %v2643_v4 = vcombine.low %v137_v62, %v144_v63  ;;  %v3260_v62 = vld [vmem:[#allocation2 + $0x3e8] ss:$16 sps:$4 sm:$0xff]   ;;  %v3265_v63 = vld [vmem:[#allocation2 + $0x404] ss:$16 sps:$4 sm:$0xff]  }
  0x5c   :  { %1818 = vmatpush1.bf16.msra.mxu0 %v3152_v5  ;;  %1990 = vmatpush1.bf16.msra.mxu1 %v3153_v8  ;;  %v3205_v5 = vld [vmem:[#allocation2 + $0x2c4] ss:$16 sps:$4 sm:$0xff]   ;;  %v59_v8 = vld [vmem:[%s3773_s0 + $0x8] sm:$0xff] }
  0x5d   :  { %1819 = vmatprep.subr.bf16.mxu0 %v3154_v9  ;;  %1991 = vmatprep.subr.bf16.mxu1 %v3156_v11  ;;  %v63_v9 = vld [vmem:[%s3773_s0 + $0x28] sm:$0xff]  ;;  %v3211_v11 = vld [vmem:[#allocation2 + $0x2e4] ss:$16 sps:$4 sm:$0xff]   ;;  %v198_v12 = vsub.bf16 %v59_v8, %v2643_v4 }
  0x5e   :  { %v202_v13 = vsub.bf16 %v63_v9, %v2643_v4  ;;  %v3271_v4 = vld [vmem:[#allocation2 + $0x424] ss:$16 sps:$4 sm:$0xff]   ;;  %v3272_v9 = vld [vmem:[#allocation2 + $0x428] ss:$16 sps:$4 sm:$0xff]  }
  0x5f   :  { %v3679_v17 = vand.u32 2147450879, %v198_v12  ;;  %v64_v8 = vld [vmem:[%s3773_s0 + $0x30] sm:$0xff] }
  0x60   :  { %1820 = vmatpush1.bf16.msra.mxu0 %v3158_v18  ;;  %1992 = vmatpush1.bf16.msra.mxu1 %v3159_v21  ;;  %v3681_v18 = vand.u32 2147450879, %v202_v13  ;;  %v203_v12 = vsub.bf16 %v64_v8, %v3665_v31  ;;  %v3280_v13 = vld [vmem:[#allocation2 + $0x44c] ss:$16 sps:$4 sm:$0xff]  }
  0x61   :  { %1821 = vmatprep.subr.bf16.mxu0 %v3160_v22  ;;  %1993 = vmatprep.subr.bf16.mxu1 %v3162_v25  ;;  %v3217_v22 = vld [vmem:[#allocation2 + $0x304] ss:$16 sps:$4 sm:$0xff]   ;;  %v3218_v25 = vld [vmem:[#allocation2 + $0x308] ss:$16 sps:$4 sm:$0xff]  }
  0x62   :  { %v2649_v21 = vcombine.high %v3679_v17, %v3681_v18  ;;  %v65_v8 = vld [vmem:[%s3773_s0 + $0x38] sm:$0xff] }
  0x64   :  { %1822 = vmatpush1.bf16.msra.mxu0 %v3164_v30  ;;  %1994 = vmatpush1.bf16.msra.mxu1 %v3165_v32  ;;  %v3229_v30 = vld [vmem:[#allocation2 + $0x344] ss:$16 sps:$4 sm:$0xff]   ;;  %v3232_v32 = vld [vmem:[#allocation2 + $0x34c] ss:$16 sps:$4 sm:$0xff]  }
  0x65   :  { %1834 = vmatprep.subr.bf16.mxu0 %v3169_v34  ;;  %2006 = vmatprep.subr.bf16.mxu1 %v3172_v35  ;;  %v3230_v34 = vld [vmem:[#allocation2 + $0x348] ss:$16 sps:$4 sm:$0xff]   ;;  %v3235_v35 = vld [vmem:[#allocation2 + $0x364] ss:$16 sps:$4 sm:$0xff]  }
  0x67   :  { %1824 = vmatmul.mubr.bf16.vlgmr.msra.gmra.mrb[0].mxu0 %v2646_v37  ;;  %1996 = vmatmul.mubr.bf16.vlgmr.msra.gmra.mrb[0].mxu1 %v2646_v37  ;;  %v3233_v37 = vld [vmem:[#allocation2 + $0x360] ss:$16 sps:$4 sm:$0xff]  }
  0x68   :  { %1835 = vmatpush1.bf16.msra.mxu0 %v3167_v36  ;;  %2007 = vmatpush1.bf16.msra.mxu1 %v3170_v38  ;;  %v3238_v36 = vld [vmem:[#allocation2 + $0x36c] ss:$16 sps:$4 sm:$0xff]   ;;  %v3236_v38 = vld [vmem:[#allocation2 + $0x368] ss:$16 sps:$4 sm:$0xff]  }
  0x69   :  { %1836 = vmatprep.subr.bf16.mxu0 %v3175_v40  ;;  %2008 = vmatprep.subr.bf16.mxu1 %v3178_v41  ;;  %v3241_v40 = vld [vmem:[#allocation2 + $0x384] ss:$16 sps:$4 sm:$0xff]   ;;  %v3244_v41 = vld [vmem:[#allocation2 + $0x38c] ss:$16 sps:$4 sm:$0xff]  }
  0x6a   :  { %1866 = vmatprep.mubr.bf16.mxu0 %v2649_v21  ;;  %2038 = vmatprep.mubr.bf16.mxu1 %v2649_v21  ;;  %v3283_v21 = vld [vmem:[#allocation2 + $0x464] ss:$16 sps:$4 sm:$0xff]  }
  0x6c   :  { %1837 = vmatpush1.bf16.msra.mxu0 %v3173_v42  ;;  %2009 = vmatpush1.bf16.msra.mxu1 %v3176_v43  ;;  %v3239_v42 = vld [vmem:[#allocation2 + $0x380] ss:$16 sps:$4 sm:$0xff]   ;;  %v3242_v43 = vld [vmem:[#allocation2 + $0x388] ss:$16 sps:$4 sm:$0xff]  }
  0x6d   :  { %1838 = vmatprep.subr.bf16.mxu0 %v3181_v44  ;;  %2010 = vmatprep.subr.bf16.mxu1 %v3184_v46  ;;  %v114_v44 = vcombine.high %v3655_v15, %v3655_v15  ;;  %v116_v46 = vcombine.high %v3657_v16, %v3657_v16  ;;  %v3253_v15 = vld [vmem:[#allocation2 + $0x3c4] ss:$16 sps:$4 sm:$0xff]   ;;  %v3251_v16 = vld [vmem:[#allocation2 + $0x3c0] ss:$16 sps:$4 sm:$0xff]  }
  0x6f   :  { %v160_v49 = vpack.i.b16 %v114_v44, %v114_v44  ;;  %v167_v50 = vpack.i.b16 %v116_v46, %v116_v46  ;;  %v3311_v44 = vld [vmem:[#allocation2 + $0x500] ss:$16 sps:$4 sm:$0xff]   ;;  %v3314_v46 = vld [vmem:[#allocation2 + $0x508] ss:$16 sps:$4 sm:$0xff]  }
  0x70   :  { %1839 = vmatpush1.bf16.msra.mxu0 %v3179_v47  ;;  %2011 = vmatpush1.bf16.msra.mxu1 %v3182_v48  ;;  %v3247_v47 = vld [vmem:[#allocation2 + $0x3a4] ss:$16 sps:$4 sm:$0xff]   ;;  %v3250_v48 = vld [vmem:[#allocation2 + $0x3ac] ss:$16 sps:$4 sm:$0xff]  }
  0x71   :  { %1840 = vmatprep.subr.bf16.mxu0 %v3187_v51  ;;  %2012 = vmatprep.subr.bf16.mxu1 %v3190_v52  ;;  %v3245_v51 = vld [vmem:[#allocation2 + $0x3a0] ss:$16 sps:$4 sm:$0xff]   ;;  %v3248_v52 = vld [vmem:[#allocation2 + $0x3a8] ss:$16 sps:$4 sm:$0xff]  }
  0x74   :  { %1841 = vmatpush1.bf16.msra.mxu0 %v3185_v53  ;;  %2013 = vmatpush1.bf16.msra.mxu1 %v3188_v54  ;;  %v165_v53 = vrot.slane %v160_v49, %v3639_v61  ;;  %v172_v54 = vrot.slane %v167_v50, %v3639_v61  ;;  %v3317_v49 = vld [vmem:[#allocation2 + $0x520] ss:$16 sps:$4 sm:$0xff]   ;;  %v3320_v50 = vld [vmem:[#allocation2 + $0x528] ss:$16 sps:$4 sm:$0xff]  }
  0x75   :  { %1842 = vmatprep.subr.bf16.mxu0 %v3193_v57  ;;  %2014 = vmatprep.subr.bf16.mxu1 %v3196_v58  ;;  %v3254_v57 = vld [vmem:[#allocation2 + $0x3c8] ss:$16 sps:$4 sm:$0xff]   ;;  %v3259_v58 = vld [vmem:[#allocation2 + $0x3e4] ss:$16 sps:$4 sm:$0xff]  }
  0x76   :  { %v3691_v56 = vcombine.low %v165_v53, %v172_v54  ;;  %v3323_v53 = vld [vmem:[#allocation2 + $0x540] ss:$16 sps:$4 sm:$0xff]   ;;  %v3326_v54 = vld [vmem:[#allocation2 + $0x548] ss:$16 sps:$4 sm:$0xff]  }
  0x78   :  { %1843 = vmatpush1.bf16.msra.mxu0 %v3191_v59  ;;  %2015 = vmatpush1.bf16.msra.mxu1 %v3194_v60  ;;  %v3262_v59 = vld [vmem:[#allocation2 + $0x3ec] ss:$16 sps:$4 sm:$0xff]   ;;  %v3257_v60 = vld [vmem:[#allocation2 + $0x3e0] ss:$16 sps:$4 sm:$0xff]  }
  0x79   :  { %1844 = vmatprep.subr.bf16.mxu0 %v3199_v0  ;;  %2016 = vmatprep.subr.bf16.mxu1 %v3202_v1  ;;  %v3268_v0 = vld [vmem:[#allocation2 + $0x40c] ss:$16 sps:$4 sm:$0xff]   ;;  %v3263_v1 = vld [vmem:[#allocation2 + $0x400] ss:$16 sps:$4 sm:$0xff]  }
  0x7c   :  { %1845 = vmatpush1.bf16.msra.mxu0 %v3197_v2  ;;  %2017 = vmatpush1.bf16.msra.mxu1 %v3200_v3  ;;  %v2648_v2 = vcombine.low %v3679_v17, %v3681_v18  ;;  %v3266_v3 = vld [vmem:[#allocation2 + $0x408] ss:$16 sps:$4 sm:$0xff]   ;;  %v3705_v17 = vand.u32 2147450879, %v203_v12  ;;  %v3275_v18 = vld [vmem:[#allocation2 + $0x440] ss:$16 sps:$4 sm:$0xff]  }
  0x7d   :  { %1846 = vmatprep.subr.bf16.mxu0 %v3205_v5  ;;  %2018 = vmatprep.subr.bf16.mxu1 %v3208_v6  ;;  %v3274_v5 = vld [vmem:[#allocation2 + $0x42c] ss:$16 sps:$4 sm:$0xff]   ;;  %v3269_v6 = vld [vmem:[#allocation2 + $0x420] ss:$16 sps:$4 sm:$0xff]  }
  0x7e   :  { %v3353_v12 = vld [vmem:[#allocation2 + $0x5e0] ss:$16 sps:$4 sm:$0xff]  }
  0x80   :  { %1847 = vmatpush1.bf16.msra.mxu0 %v3203_v7  ;;  %2019 = vmatpush1.bf16.msra.mxu1 %v3206_v10  ;;  %v60_v7 = vld [vmem:[%s3773_s0 + $0x10] sm:$0xff] }
  0x81   :  { %1848 = vmatprep.subr.bf16.mxu0 %v3211_v11  ;;  %2020 = vmatprep.subr.bf16.mxu1 %v3214_v14  ;;  %v3277_v10 = vld [vmem:[#allocation2 + $0x444] ss:$16 sps:$4 sm:$0xff]   ;;  %v199_v11 = vsub.bf16 %v60_v7, %v3665_v31  ;;  %v3281_v31 = vld [vmem:[#allocation2 + $0x460] ss:$16 sps:$4 sm:$0xff]   ;;  %v61_v7 = vld [vmem:[%s3773_s0 + $0x18] sm:$0xff] }
  0x83   :  { %v3703_v14 = vand.u32 2147450879, %v199_v11  ;;  %v200_v11 = vsub.bf16 %v61_v7, %v3691_v56  ;;  %v3436_v7 = vld [vmem:[#allocation2 + $0x78c] ss:$16 sps:$4 sm:$0xff]  }
  0x84   :  { %1849 = vmatpush1.bf16.msra.mxu0 %v3209_v19  ;;  %2021 = vmatpush1.bf16.msra.mxu1 %v3212_v20  ;;  %v3278_v19 = vld [vmem:[#allocation2 + $0x448] ss:$16 sps:$4 sm:$0xff]  }
  0x85   :  { %1850 = vmatprep.subr.bf16.mxu0 %v3217_v22  ;;  %2022 = vmatprep.subr.bf16.mxu1 %v3220_v23  ;;  %v2651_v20 = vcombine.high %v3703_v14, %v3705_v17  ;;  %v3286_v22 = vld [vmem:[#allocation2 + $0x46c] ss:$16 sps:$4 sm:$0xff]   ;;  %v3284_v23 = vld [vmem:[#allocation2 + $0x468] ss:$16 sps:$4 sm:$0xff]  }
  0x88   :  { %1851 = vmatpush1.bf16.msra.mxu0 %v3215_v24  ;;  %2023 = vmatpush1.bf16.msra.mxu1 %v3218_v25  ;;  %v3289_v24 = vld [vmem:[#allocation2 + $0x484] ss:$16 sps:$4 sm:$0xff]   ;;  %v3292_v25 = vld [vmem:[#allocation2 + $0x48c] ss:$16 sps:$4 sm:$0xff]  }
  0x89   :  { %1852 = vmatprep.subr.bf16.mxu0 %v3223_v26  ;;  %2024 = vmatprep.subr.bf16.mxu1 %v3226_v27  ;;  %v3287_v26 = vld [vmem:[#allocation2 + $0x480] ss:$16 sps:$4 sm:$0xff]   ;;  %v3290_v27 = vld [vmem:[#allocation2 + $0x488] ss:$16 sps:$4 sm:$0xff]  }
  0x8c   :  { %1853 = vmatpush1.bf16.msra.mxu0 %v3221_v28  ;;  %2025 = vmatpush1.bf16.msra.mxu1 %v3224_v29  ;;  %v3295_v28 = vld [vmem:[#allocation2 + $0x4a4] ss:$16 sps:$4 sm:$0xff]   ;;  %v3298_v29 = vld [vmem:[#allocation2 + $0x4ac] ss:$16 sps:$4 sm:$0xff]  }
  0x8d   :  { %1854 = vmatprep.subr.bf16.mxu0 %v3229_v30  ;;  %2026 = vmatprep.subr.bf16.mxu1 %v3232_v32  ;;  %v3293_v30 = vld [vmem:[#allocation2 + $0x4a0] ss:$16 sps:$4 sm:$0xff]   ;;  %v3296_v32 = vld [vmem:[#allocation2 + $0x4a8] ss:$16 sps:$4 sm:$0xff]  }
  0x90   :  { %1855 = vmatpush1.bf16.msra.mxu0 %v3227_v33  ;;  %2027 = vmatpush1.bf16.msra.mxu1 %v3230_v34  ;;  %v3301_v33 = vld [vmem:[#allocation2 + $0x4c4] ss:$16 sps:$4 sm:$0xff]   ;;  %v3304_v34 = vld [vmem:[#allocation2 + $0x4cc] ss:$16 sps:$4 sm:$0xff]  }
  0x91   :  { %1856 = vmatprep.subr.bf16.mxu0 %v3235_v35  ;;  %2028 = vmatprep.subr.bf16.mxu1 %v3238_v36  ;;  %v3299_v35 = vld [vmem:[#allocation2 + $0x4c0] ss:$16 sps:$4 sm:$0xff]   ;;  %v3302_v36 = vld [vmem:[#allocation2 + $0x4c8] ss:$16 sps:$4 sm:$0xff]  }
  0x94   :  { %1857 = vmatpush1.bf16.msra.mxu0 %v3233_v37  ;;  %2029 = vmatpush1.bf16.msra.mxu1 %v3236_v38  ;;  %v3307_v37 = vld [vmem:[#allocation2 + $0x4e4] ss:$16 sps:$4 sm:$0xff]   ;;  %v3310_v38 = vld [vmem:[#allocation2 + $0x4ec] ss:$16 sps:$4 sm:$0xff]  }
  0x95   :  { %1858 = vmatprep.subr.bf16.mxu0 %v3241_v40  ;;  %2030 = vmatprep.subr.bf16.mxu1 %v3244_v41  ;;  %v3305_v40 = vld [vmem:[#allocation2 + $0x4e0] ss:$16 sps:$4 sm:$0xff]   ;;  %v3308_v41 = vld [vmem:[#allocation2 + $0x4e8] ss:$16 sps:$4 sm:$0xff]  }
  0x98   :  { %1859 = vmatpush1.bf16.msra.mxu0 %v3239_v42  ;;  %2031 = vmatpush1.bf16.msra.mxu1 %v3242_v43  ;;  %v3313_v42 = vld [vmem:[#allocation2 + $0x504] ss:$16 sps:$4 sm:$0xff]   ;;  %v3316_v43 = vld [vmem:[#allocation2 + $0x50c] ss:$16 sps:$4 sm:$0xff]  }
  0x99   :  { %1860 = vmatprep.subr.bf16.mxu0 %v3247_v47  ;;  %2032 = vmatprep.subr.bf16.mxu1 %v3250_v48  ;;  %v3319_v47 = vld [vmem:[#allocation2 + $0x524] ss:$16 sps:$4 sm:$0xff]   ;;  %v3322_v48 = vld [vmem:[#allocation2 + $0x52c] ss:$16 sps:$4 sm:$0xff]  }
  0x9c   :  { %1861 = vmatpush1.bf16.msra.mxu0 %v3245_v51  ;;  %2033 = vmatpush1.bf16.msra.mxu1 %v3248_v52  ;;  %v3325_v51 = vld [vmem:[#allocation2 + $0x544] ss:$16 sps:$4 sm:$0xff]   ;;  %v3328_v52 = vld [vmem:[#allocation2 + $0x54c] ss:$16 sps:$4 sm:$0xff]  }
  0x9d   :  { %1862 = vmatprep.subr.bf16.mxu0 %v3253_v15  ;;  %2034 = vmatprep.subr.bf16.mxu1 %v3256_v55  ;;  %v3331_v15 = vld [vmem:[#allocation2 + $0x564] ss:$16 sps:$4 sm:$0xff]   ;;  %v3334_v55 = vld [vmem:[#allocation2 + $0x56c] ss:$16 sps:$4 sm:$0xff]  }
  0xa0   :  { %1863 = vmatpush1.bf16.msra.mxu0 %v3251_v16  ;;  %2035 = vmatpush1.bf16.msra.mxu1 %v3254_v57  ;;  %v3329_v16 = vld [vmem:[#allocation2 + $0x560] ss:$16 sps:$4 sm:$0xff]   ;;  %v3332_v57 = vld [vmem:[#allocation2 + $0x568] ss:$16 sps:$4 sm:$0xff]  }
  0xa1   :  { %1864 = vmatprep.subr.bf16.mxu0 %v3259_v58  ;;  %2036 = vmatprep.subr.bf16.mxu1 %v3262_v59  ;;  %v3337_v58 = vld [vmem:[#allocation2 + $0x584] ss:$16 sps:$4 sm:$0xff]   ;;  %v3340_v59 = vld [vmem:[#allocation2 + $0x58c] ss:$16 sps:$4 sm:$0xff]  }
  0xa4   :  { %1865 = vmatpush1.bf16.msra.mxu0 %v3257_v60  ;;  %2037 = vmatpush1.bf16.msra.mxu1 %v3260_v62  ;;  %v3335_v60 = vld [vmem:[#allocation2 + $0x580] ss:$16 sps:$4 sm:$0xff]   ;;  %v3338_v62 = vld [vmem:[#allocation2 + $0x588] ss:$16 sps:$4 sm:$0xff]  }
  0xa5   :  { %1877 = vmatprep.subr.bf16.mxu0 %v3265_v63  ;;  %2049 = vmatprep.subr.bf16.mxu1 %v3268_v0  ;;  %v3343_v63 = vld [vmem:[#allocation2 + $0x5a4] ss:$16 sps:$4 sm:$0xff]   ;;  %v3346_v0 = vld [vmem:[#allocation2 + $0x5ac] ss:$16 sps:$4 sm:$0xff]  }
  0xa7   :  { %1867 = vmatmul.mubr.bf16.vlgmr.msra.gmra.mrb[0].mxu0 %v2648_v2  ;;  %2039 = vmatmul.mubr.bf16.vlgmr.msra.gmra.mrb[0].mxu1 %v2648_v2  ;;  %v3344_v2 = vld [vmem:[#allocation2 + $0x5a8] ss:$16 sps:$4 sm:$0xff]  }
  0xa8   :  { %1878 = vmatpush1.bf16.msra.mxu0 %v3263_v1  ;;  %2050 = vmatpush1.bf16.msra.mxu1 %v3266_v3  ;;  %v3341_v1 = vld [vmem:[#allocation2 + $0x5a0] ss:$16 sps:$4 sm:$0xff]   ;;  %v3349_v3 = vld [vmem:[#allocation2 + $0x5c4] ss:$16 sps:$4 sm:$0xff]  }
  0xa9   :  { %1879 = vmatprep.subr.bf16.mxu0 %v3271_v4  ;;  %2051 = vmatprep.subr.bf16.mxu1 %v3274_v5  ;;  %v3352_v4 = vld [vmem:[#allocation2 + $0x5cc] ss:$16 sps:$4 sm:$0xff]   ;;  %v3347_v5 = vld [vmem:[#allocation2 + $0x5c0] ss:$16 sps:$4 sm:$0xff]  }
  0xaa   :  { %1909 = vmatprep.mubr.bf16.mxu0 %v2651_v20  ;;  %2081 = vmatprep.mubr.bf16.mxu1 %v2651_v20  ;;  %v3364_v20 = vld [vmem:[#allocation2 + $0x60c] ss:$16 sps:$4 sm:$0xff]  }
  0xac   :  { %1880 = vmatpush1.bf16.msra.mxu0 %v3269_v6  ;;  %2052 = vmatpush1.bf16.msra.mxu1 %v3272_v9  ;;  %v3350_v6 = vld [vmem:[#allocation2 + $0x5c8] ss:$16 sps:$4 sm:$0xff]   ;;  %v3355_v9 = vld [vmem:[#allocation2 + $0x5e4] ss:$16 sps:$4 sm:$0xff]  }
  0xad   :  { %1881 = vmatprep.subr.bf16.mxu0 %v3277_v10  ;;  %2053 = vmatprep.subr.bf16.mxu1 %v3280_v13  ;;  %v3358_v10 = vld [vmem:[#allocation2 + $0x5ec] ss:$16 sps:$4 sm:$0xff]   ;;  %v3356_v13 = vld [vmem:[#allocation2 + $0x5e8] ss:$16 sps:$4 sm:$0xff]  }
  0xb0   :  { %1882 = vmatpush1.bf16.msra.mxu0 %v3275_v18  ;;  %2054 = vmatpush1.bf16.msra.mxu1 %v3278_v19  ;;  %v204_v18 = vsub.bf16 %v65_v8, %v3691_v56  ;;  %v3361_v19 = vld [vmem:[#allocation2 + $0x604] ss:$16 sps:$4 sm:$0xff]   ;;  %v3431_v8 = vld [vmem:[#allocation2 + $0x780] ss:$16 sps:$4 sm:$0xff]  }
  0xb1   :  { %1883 = vmatprep.subr.bf16.mxu0 %v3283_v21  ;;  %2055 = vmatprep.subr.bf16.mxu1 %v3286_v22  ;;  %v3717_v21 = vand.u32 2147450879, %v200_v11  ;;  %v3367_v56 = vld [vmem:[#allocation2 + $0x624] ss:$16 sps:$4 sm:$0xff]   ;;  %v3442_v11 = vld [vmem:[#allocation2 + $0x7ac] ss:$16 sps:$4 sm:$0xff]  }
  0xb2   :  { %v3719_v22 = vand.u32 2147450879, %v204_v18  ;;  %v3437_v18 = vld [vmem:[#allocation2 + $0x7a0] ss:$16 sps:$4 sm:$0xff]  }
  0xb4   :  { %1884 = vmatpush1.bf16.msra.mxu0 %v3281_v31  ;;  %2056 = vmatpush1.bf16.msra.mxu1 %v3284_v23  ;;  %v3359_v31 = vld [vmem:[#allocation2 + $0x600] ss:$16 sps:$4 sm:$0xff]   ;;  %v2650_v23 = vcombine.low %v3703_v14, %v3705_v17  ;;  %v3374_v17 = vld [vmem:[#allocation2 + $0x648] ss:$16 sps:$4 sm:$0xff]  }
  0xb5   :  { %1885 = vmatprep.subr.bf16.mxu0 %v3289_v24  ;;  %2057 = vmatprep.subr.bf16.mxu1 %v3292_v25  ;;  %v3362_v24 = vld [vmem:[#allocation2 + $0x608] ss:$16 sps:$4 sm:$0xff]   ;;  %v3370_v25 = vld [vmem:[#allocation2 + $0x62c] ss:$16 sps:$4 sm:$0xff]   ;;  %v3371_v14 = vld [vmem:[#allocation2 + $0x640] ss:$16 sps:$4 sm:$0xff]  }
  0xb8   :  { %1886 = vmatpush1.bf16.msra.mxu0 %v3287_v26  ;;  %2058 = vmatpush1.bf16.msra.mxu1 %v3290_v27  ;;  %v3365_v26 = vld [vmem:[#allocation2 + $0x620] ss:$16 sps:$4 sm:$0xff]   ;;  %v3368_v27 = vld [vmem:[#allocation2 + $0x628] ss:$16 sps:$4 sm:$0xff]  }
  0xb9   :  { %1887 = vmatprep.subr.bf16.mxu0 %v3295_v28  ;;  %2059 = vmatprep.subr.bf16.mxu1 %v3298_v29  ;;  %v2653_v28 = vcombine.high %v3717_v21, %v3719_v22  ;;  %v3373_v29 = vld [vmem:[#allocation2 + $0x644] ss:$16 sps:$4 sm:$0xff]  }
  0xbc   :  { %1888 = vmatpush1.bf16.msra.mxu0 %v3293_v30  ;;  %2060 = vmatpush1.bf16.msra.mxu1 %v3296_v32  ;;  %v3376_v30 = vld [vmem:[#allocation2 + $0x64c] ss:$16 sps:$4 sm:$0xff]   ;;  %v3379_v32 = vld [vmem:[#allocation2 + $0x664] ss:$16 sps:$4 sm:$0xff]  }
  0xbd   :  { %1889 = vmatprep.subr.bf16.mxu0 %v3301_v33  ;;  %2061 = vmatprep.subr.bf16.mxu1 %v3304_v34  ;;  %v3382_v33 = vld [vmem:[#allocation2 + $0x66c] ss:$16 sps:$4 sm:$0xff]   ;;  %v3377_v34 = vld [vmem:[#allocation2 + $0x660] ss:$16 sps:$4 sm:$0xff]  }
  0xc0   :  { %1890 = vmatpush1.bf16.msra.mxu0 %v3299_v35  ;;  %2062 = vmatpush1.bf16.msra.mxu1 %v3302_v36  ;;  %v3380_v35 = vld [vmem:[#allocation2 + $0x668] ss:$16 sps:$4 sm:$0xff]   ;;  %v3385_v36 = vld [vmem:[#allocation2 + $0x684] ss:$16 sps:$4 sm:$0xff]  }
  0xc1   :  { %1891 = vmatprep.subr.bf16.mxu0 %v3307_v37  ;;  %2063 = vmatprep.subr.bf16.mxu1 %v3310_v38  ;;  %v3388_v37 = vld [vmem:[#allocation2 + $0x68c] ss:$16 sps:$4 sm:$0xff]   ;;  %v3383_v38 = vld [vmem:[#allocation2 + $0x680] ss:$16 sps:$4 sm:$0xff]  }
  0xc4   :  { %1892 = vmatpush1.bf16.msra.mxu0 %v3305_v40  ;;  %2064 = vmatpush1.bf16.msra.mxu1 %v3308_v41  ;;  %v3386_v40 = vld [vmem:[#allocation2 + $0x688] ss:$16 sps:$4 sm:$0xff]   ;;  %v3391_v41 = vld [vmem:[#allocation2 + $0x6a4] ss:$16 sps:$4 sm:$0xff]  }
  0xc5   :  { %1893 = vmatprep.subr.bf16.mxu0 %v3313_v42  ;;  %2065 = vmatprep.subr.bf16.mxu1 %v3316_v43  ;;  %v3394_v42 = vld [vmem:[#allocation2 + $0x6ac] ss:$16 sps:$4 sm:$0xff]   ;;  %v3389_v43 = vld [vmem:[#allocation2 + $0x6a0] ss:$16 sps:$4 sm:$0xff]  }
  0xc8   :  { %1894 = vmatpush1.bf16.msra.mxu0 %v3311_v44  ;;  %2066 = vmatpush1.bf16.msra.mxu1 %v3314_v46  ;;  %v3392_v44 = vld [vmem:[#allocation2 + $0x6a8] ss:$16 sps:$4 sm:$0xff]   ;;  %v3397_v46 = vld [vmem:[#allocation2 + $0x6c4] ss:$16 sps:$4 sm:$0xff]  }
  0xc9   :  { %1895 = vmatprep.subr.bf16.mxu0 %v3319_v47  ;;  %2067 = vmatprep.subr.bf16.mxu1 %v3322_v48  ;;  %v3400_v47 = vld [vmem:[#allocation2 + $0x6cc] ss:$16 sps:$4 sm:$0xff]   ;;  %v3395_v48 = vld [vmem:[#allocation2 + $0x6c0] ss:$16 sps:$4 sm:$0xff]  }
  0xcc   :  { %1896 = vmatpush1.bf16.msra.mxu0 %v3317_v49  ;;  %2068 = vmatpush1.bf16.msra.mxu1 %v3320_v50  ;;  %v3398_v49 = vld [vmem:[#allocation2 + $0x6c8] ss:$16 sps:$4 sm:$0xff]   ;;  %v3403_v50 = vld [vmem:[#allocation2 + $0x6e4] ss:$16 sps:$4 sm:$0xff]  }
  0xcd   :  { %1897 = vmatprep.subr.bf16.mxu0 %v3325_v51  ;;  %2069 = vmatprep.subr.bf16.mxu1 %v3328_v52  ;;  %v3406_v51 = vld [vmem:[#allocation2 + $0x6ec] ss:$16 sps:$4 sm:$0xff]   ;;  %v3401_v52 = vld [vmem:[#allocation2 + $0x6e0] ss:$16 sps:$4 sm:$0xff]  }
  0xd0   :  { %1898 = vmatpush1.bf16.msra.mxu0 %v3323_v53  ;;  %2070 = vmatpush1.bf16.msra.mxu1 %v3326_v54  ;;  %v3404_v53 = vld [vmem:[#allocation2 + $0x6e8] ss:$16 sps:$4 sm:$0xff]   ;;  %v3409_v54 = vld [vmem:[#allocation2 + $0x704] ss:$16 sps:$4 sm:$0xff]  }
  0xd1   :  { %1899 = vmatprep.subr.bf16.mxu0 %v3331_v15  ;;  %2071 = vmatprep.subr.bf16.mxu1 %v3334_v55  ;;  %v3412_v15 = vld [vmem:[#allocation2 + $0x70c] ss:$16 sps:$4 sm:$0xff]   ;;  %v3407_v55 = vld [vmem:[#allocation2 + $0x700] ss:$16 sps:$4 sm:$0xff]  }
  0xd4   :  { %1900 = vmatpush1.bf16.msra.mxu0 %v3329_v16  ;;  %2072 = vmatpush1.bf16.msra.mxu1 %v3332_v57  ;;  %v3410_v16 = vld [vmem:[#allocation2 + $0x708] ss:$16 sps:$4 sm:$0xff]   ;;  %v3415_v57 = vld [vmem:[#allocation2 + $0x724] ss:$16 sps:$4 sm:$0xff]  }
  0xd5   :  { %1901 = vmatprep.subr.bf16.mxu0 %v3337_v58  ;;  %2073 = vmatprep.subr.bf16.mxu1 %v3340_v59  ;;  %v3418_v58 = vld [vmem:[#allocation2 + $0x72c] ss:$16 sps:$4 sm:$0xff]   ;;  %v3413_v59 = vld [vmem:[#allocation2 + $0x720] ss:$16 sps:$4 sm:$0xff]  }
  0xd8   :  { %1902 = vmatpush1.bf16.msra.mxu0 %v3335_v60  ;;  %2074 = vmatpush1.bf16.msra.mxu1 %v3338_v62  ;;  %v3416_v60 = vld [vmem:[#allocation2 + $0x728] ss:$16 sps:$4 sm:$0xff]   ;;  %v3421_v62 = vld [vmem:[#allocation2 + $0x744] ss:$16 sps:$4 sm:$0xff]  }
  0xd9   :  { %1903 = vmatprep.subr.bf16.mxu0 %v3343_v63  ;;  %2075 = vmatprep.subr.bf16.mxu1 %v3346_v0  ;;  %v3424_v63 = vld [vmem:[#allocation2 + $0x74c] ss:$16 sps:$4 sm:$0xff]   ;;  %v3419_v0 = vld [vmem:[#allocation2 + $0x740] ss:$16 sps:$4 sm:$0xff]  }
  0xdc   :  { %1904 = vmatpush1.bf16.msra.mxu0 %v3341_v1  ;;  %2076 = vmatpush1.bf16.msra.mxu1 %v3344_v2  ;;  %v3422_v1 = vld [vmem:[#allocation2 + $0x748] ss:$16 sps:$4 sm:$0xff]   ;;  %v3427_v2 = vld [vmem:[#allocation2 + $0x764] ss:$16 sps:$4 sm:$0xff]  }
  0xdd   :  { %1905 = vmatprep.subr.bf16.mxu0 %v3349_v3  ;;  %2077 = vmatprep.subr.bf16.mxu1 %v3352_v4  ;;  %v3430_v3 = vld [vmem:[#allocation2 + $0x76c] ss:$16 sps:$4 sm:$0xff]   ;;  %v3425_v4 = vld [vmem:[#allocation2 + $0x760] ss:$16 sps:$4 sm:$0xff]  }
  0xe0   :  { %1906 = vmatpush1.bf16.msra.mxu0 %v3347_v5  ;;  %2078 = vmatpush1.bf16.msra.mxu1 %v3350_v6  ;;  %v3428_v5 = vld [vmem:[#allocation2 + $0x768] ss:$16 sps:$4 sm:$0xff]   ;;  %v3433_v6 = vld [vmem:[#allocation2 + $0x784] ss:$16 sps:$4 sm:$0xff]  }
  0xe1   :  { %1907 = vmatprep.subr.bf16.mxu0 %v3355_v9  ;;  %2079 = vmatprep.subr.bf16.mxu1 %v3358_v10  ;;  %v3434_v9 = vld [vmem:[#allocation2 + $0x788] ss:$16 sps:$4 sm:$0xff]   ;;  %v3439_v10 = vld [vmem:[#allocation2 + $0x7a4] ss:$16 sps:$4 sm:$0xff]  }
  0xe4   :  { %1908 = vmatpush1.bf16.msra.mxu0 %v3353_v12  ;;  %2080 = vmatpush1.bf16.msra.mxu1 %v3356_v13  ;;  %v461_v12 = vld [vmem:[#allocation2 + $0x7c0] sm:$0xff]  ;;  %v462_v13 = vld [vmem:[#allocation2 + $0x7c8] sm:$0xff] }
  0xe5   :  { %1920 = vmatprep.subr.bf16.mxu0 %v3361_v19  ;;  %2092 = vmatprep.subr.bf16.mxu1 %v3364_v20  ;;  %v3440_v19 = vld [vmem:[#allocation2 + $0x7a8] ss:$16 sps:$4 sm:$0xff]   ;;  %v2903_v20 = vcombine.high %v461_v12, %v461_v12 }
  0xe7   :  { %1910 = vmatmul.mubr.bf16.vlgmr.msra.gmra.mrb[0].mxu0 %v2650_v23  ;;  %2082 = vmatmul.mubr.bf16.vlgmr.msra.gmra.mrb[0].mxu1 %v2650_v23  ;;  %v2902_v23 = vcombine.low %v461_v12, %v461_v12 }
  0xe8   :  { %1921 = vmatpush1.bf16.msra.mxu0 %v3359_v31  ;;  %2093 = vmatpush1.bf16.msra.mxu1 %v3362_v24  ;;  %v2905_v31 = vcombine.high %v462_v13, %v462_v13  ;;  %v2904_v24 = vcombine.low %v462_v13, %v462_v13 }
  0xe9   :  { %1922 = vmatprep.subr.bf16.mxu0 %v3367_v56  ;;  %2094 = vmatprep.subr.bf16.mxu1 %v3370_v25  ;;  %v1780_v56 = vsel %vm1778_vm1, %v2902_v23, 0 }
  0xea   :  { %2907 = vmatprep.mubr.msk.bf16.mxu0 %vm1774_vm0, %v2653_v28  ;;  %2909 = vmatprep.mubr.msk.bf16.mxu1 %vm1774_vm0, %v2653_v28  ;;  %v1786_v25 = vsel %vm1778_vm1, %v2904_v24, 0  ;;  %v2652_v28 = vcombine.low %v3717_v21, %v3719_v22  ;;  %v3457_v21 = vld [vmem:[#allocation4 + $0x10] sm:$0xff]  }
  0xeb   :  { %v3458_v22 = vld [vmem:[#allocation4 + $0x90] sm:$0xff]  }
  0xec   :  { %1923 = vmatpush1.bf16.msra.mxu0 %v3365_v26  ;;  %2095 = vmatpush1.bf16.msra.mxu1 %v3368_v27  ;;  %v3447_v26 = vld [vmem:[#allocation4 + $0x40] sm:$0xff]  }
  0xed   :  { %1924 = vmatprep.subr.bf16.mxu0 %v3373_v29  ;;  %2096 = vmatprep.subr.bf16.mxu1 %v3376_v30  ;;  %v3448_v27 = vld [vmem:[#allocation4 + $0xc0] sm:$0xff]  }
  0xee   :  { %v3449_v29 = vld [vmem:[#allocation4] sm:$0xff]  }
  0xef   :  { %v3450_v30 = vld [vmem:[#allocation4 + $0x80] sm:$0xff]  }
  0xf0   :  { %1925 = vmatpush1.bf16.msra.mxu0 %v3371_v14  ;;  %2097 = vmatpush1.bf16.msra.mxu1 %v3374_v17  ;;  %v3451_v14 = vld [vmem:[#allocation4 + $0x48] sm:$0xff]  }
  0xf1   :  { %1926 = vmatprep.subr.bf16.mxu0 %v3379_v32  ;;  %2098 = vmatprep.subr.bf16.mxu1 %v3382_v33  ;;  %v3452_v17 = vld [vmem:[#allocation4 + $0xc8] sm:$0xff]  }
  0xf2   :  { %v3453_v32 = vld [vmem:[#allocation4 + $0x8] sm:$0xff]  }
  0xf3   :  { %v3454_v33 = vld [vmem:[#allocation4 + $0x88] sm:$0xff]  }
  0xf4   :  { %1927 = vmatpush1.bf16.msra.mxu0 %v3377_v34  ;;  %2099 = vmatpush1.bf16.msra.mxu1 %v3380_v35  ;;  %v3455_v34 = vld [vmem:[#allocation4 + $0x50] sm:$0xff]  }
  0xf5   :  { %1928 = vmatprep.subr.bf16.mxu0 %v3385_v36  ;;  %2100 = vmatprep.subr.bf16.mxu1 %v3388_v37  ;;  %v3456_v35 = vld [vmem:[#allocation4 + $0xd0] sm:$0xff]   ;;  %v3459_v36 = vld [vmem:[#allocation4 + $0x58] sm:$0xff]  }
  0xf6   :  { %v3460_v37 = vld [vmem:[#allocation4 + $0xd8] sm:$0xff]  }
  0xf8   :  { %1929 = vmatpush1.bf16.msra.mxu0 %v3383_v38  ;;  %2101 = vmatpush1.bf16.msra.mxu1 %v3386_v40  ;;  %v3461_v38 = vld [vmem:[#allocation4 + $0x18] sm:$0xff]  }
  0xf9   :  { %1930 = vmatprep.subr.bf16.mxu0 %v3391_v41  ;;  %2102 = vmatprep.subr.bf16.mxu1 %v3394_v42  ;;  %v3462_v40 = vld [vmem:[#allocation4 + $0x98] sm:$0xff]   ;;  %v3463_v41 = vld [vmem:[#allocation4 + $0x60] sm:$0xff]  }
  0xfa   :  { %v3464_v42 = vld [vmem:[#allocation4 + $0xe0] sm:$0xff]  }
  0xfc   :  { %1931 = vmatpush1.bf16.msra.mxu0 %v3389_v43  ;;  %2103 = vmatpush1.bf16.msra.mxu1 %v3392_v44  ;;  %v3465_v43 = vld [vmem:[#allocation4 + $0x20] sm:$0xff]  }
  0xfd   :  { %1932 = vmatprep.subr.bf16.mxu0 %v3397_v46  ;;  %2104 = vmatprep.subr.bf16.mxu1 %v3400_v47  ;;  %v3466_v44 = vld [vmem:[#allocation4 + $0xa0] sm:$0xff]   ;;  %v3467_v46 = vld [vmem:[#allocation4 + $0x68] sm:$0xff]  }
  0xfe   :  { %v3468_v47 = vld [vmem:[#allocation4 + $0xe8] sm:$0xff]  }
 0x100   :  { %1933 = vmatpush1.bf16.msra.mxu0 %v3395_v48  ;;  %2105 = vmatpush1.bf16.msra.mxu1 %v3398_v49  ;;  %v3469_v48 = vld [vmem:[#allocation4 + $0x28] sm:$0xff]  }
 0x101   :  { %1934 = vmatprep.subr.bf16.mxu0 %v3403_v50  ;;  %2106 = vmatprep.subr.bf16.mxu1 %v3406_v51  ;;  %v3470_v49 = vld [vmem:[#allocation4 + $0xa8] sm:$0xff]   ;;  %v3471_v50 = vld [vmem:[#allocation4 + $0x70] sm:$0xff]  }
 0x102   :  { %v3472_v51 = vld [vmem:[#allocation4 + $0xf0] sm:$0xff]  }
 0x104   :  { %1935 = vmatpush1.bf16.msra.mxu0 %v3401_v52  ;;  %2107 = vmatpush1.bf16.msra.mxu1 %v3404_v53  ;;  %v3473_v52 = vld [vmem:[#allocation4 + $0x30] sm:$0xff]  }
 0x105   :  { %1936 = vmatprep.subr.bf16.mxu0 %v3409_v54  ;;  %2108 = vmatprep.subr.bf16.mxu1 %v3412_v15  ;;  %v3474_v53 = vld [vmem:[#allocation4 + $0xb0] sm:$0xff]   ;;  %v3475_v54 = vld [vmem:[#allocation4 + $0x78] sm:$0xff]  }
 0x106   :  { %v3476_v15 = vld [vmem:[#allocation4 + $0xf8] sm:$0xff]  }
 0x108   :  { %1937 = vmatpush1.bf16.msra.mxu0 %v3407_v55  ;;  %2109 = vmatpush1.bf16.msra.mxu1 %v3410_v16  ;;  %v3477_v55 = vld [vmem:[#allocation4 + $0x38] sm:$0xff]  }
 0x109   :  { %1938 = vmatprep.subr.bf16.mxu0 %v3415_v57  ;;  %2110 = vmatprep.subr.bf16.mxu1 %v3418_v58  ;;  %v3478_v16 = vld [vmem:[#allocation4 + $0xb8] sm:$0xff]   ;;  %v475_v57 = vsub.s32 2, %v3630_v45  ;;  %v463_v58 = vld [vmem:[%s3776_s3] sm:$0xf] }
 0x10c   :  { %1939 = vmatpush1.bf16.msra.mxu0 %v3413_v59  ;;  %2111 = vmatpush1.bf16.msra.mxu1 %v3416_v60  ;;  %v471_v59 = vsub.s32 1, %v3630_v45  ;;  %v479_v60 = vsub.s32 3, %v3630_v45 }
 0x10d   :  { %1940 = vmatprep.subr.bf16.mxu0 %v3421_v62  ;;  %2112 = vmatprep.subr.bf16.mxu1 %v3424_v63  ;;  %v468_v62 = vrot.slane %v463_v58, %v3639_v61  ;;  %v476_v63 = vrot.slane %v463_v58, %v475_v57 }
 0x110   :  { %1941 = vmatpush1.bf16.msra.mxu0 %v3419_v0  ;;  %2113 = vmatpush1.bf16.msra.mxu1 %v3422_v1  ;;  %v472_v0 = vrot.slane %v463_v58, %v471_v59  ;;  %v480_v1 = vrot.slane %v463_v58, %v479_v60 }
 0x111   :  { %1942 = vmatprep.subr.bf16.mxu0 %v3427_v2  ;;  %2114 = vmatprep.subr.bf16.mxu1 %v3430_v3 }
 0x114   :  { %1943 = vmatpush1.bf16.msra.mxu0 %v3425_v4  ;;  %2115 = vmatpush1.bf16.msra.mxu1 %v3428_v5 }
 0x115   :  { %1944 = vmatprep.subr.bf16.mxu0 %v3433_v6  ;;  %2116 = vmatprep.subr.bf16.mxu1 %v3436_v7 }
 0x118   :  { %1945 = vmatpush1.bf16.msra.mxu0 %v3431_v8  ;;  %2117 = vmatpush1.bf16.msra.mxu1 %v3434_v9 }
 0x119   :  { %1946 = vmatprep.subr.bf16.mxu0 %v3439_v10  ;;  %2118 = vmatprep.subr.bf16.mxu1 %v3442_v11 }
 0x11c   :  { %1947 = vmatpush1.bf16.msra.mxu0 %v3437_v18  ;;  %2119 = vmatpush1.bf16.msra.mxu1 %v3440_v19 }
 0x11d   :  { %2906 = vmatprep.subr.msk.bf16.mxu0 %vm1778_vm1, %v2903_v20  ;;  %2908 = vmatprep.subr.msk.bf16.mxu1 %vm1778_vm1, %v2905_v31 }
 0x120   :  { %1949 = vmatpush1.bf16.msra.mxu0 %v1780_v56  ;;  %2121 = vmatpush1.bf16.msra.mxu1 %v1786_v25 }
 0x121   :  { %2956 = vmatprep.subr.bf16.mxu0 %v3447_v26  ;;  %2978 = vmatprep.subr.bf16.mxu1 %v3448_v27 }
 0x123   :  { %1953 = vmatmul.mubr.bf16.vlgmr.msra.gmra.mrb[0].mxu0 %v2652_v28  ;;  %2125 = vmatmul.mubr.bf16.vlgmr.msra.gmra.mrb[0].mxu1 %v2652_v28 }
 0x124   :  { %2957 = vmatpush3.bf16.msra.mxu0 %v3449_v29  ;;  %2979 = vmatpush3.bf16.msra.mxu1 %v3450_v30 }
 0x125   :  { %2958 = vmatprep.subr.bf16.mxu0 %v3451_v14  ;;  %2980 = vmatprep.subr.bf16.mxu1 %v3452_v17  ;;  %v3479_v17 = vld [vmem:[%s3779_s6] sm:$0xff]  }
 0x128   :  { %2959 = vmatpush3.bf16.msra.mxu0 %v3453_v32  ;;  %2981 = vmatpush3.bf16.msra.mxu1 %v3454_v33  ;;  %v3558_v32 = vmov 0.0   ;;  %v3480_v33 = vld [vmem:[%s3779_s6 + $0x8] sm:$0xff]  }
 0x129   :  { %2960 = vmatprep.subr.bf16.mxu0 %v3455_v34  ;;  %2982 = vmatprep.subr.bf16.mxu1 %v3456_v35  ;;  %v3481_v34 = vld [vmem:[%s3779_s6 + $0x10] sm:$0xff]   ;;  %v3482_v35 = vld [vmem:[%s3779_s6 + $0x18] sm:$0xff]  }
 0x12c   :  { %2961 = vmatpush3.bf16.msra.mxu0 %v3457_v21  ;;  %2983 = vmatpush3.bf16.msra.mxu1 %v3458_v22  ;;  %v3483_v21 = vld [vmem:[%s3779_s6 + $0x20] sm:$0xff]   ;;  %v3484_v22 = vld [vmem:[%s3779_s6 + $0x28] sm:$0xff]  }
 0x12d   :  { %2962 = vmatprep.subr.bf16.mxu0 %v3459_v36  ;;  %2984 = vmatprep.subr.bf16.mxu1 %v3460_v37  ;;  %v3485_v36 = vld [vmem:[%s3779_s6 + $0x30] sm:$0xff]   ;;  %v3486_v37 = vld [vmem:[%s3779_s6 + $0x38] sm:$0xff]  }
 0x130   :  { %2963 = vmatpush3.bf16.msra.mxu0 %v3461_v38  ;;  %2985 = vmatpush3.bf16.msra.mxu1 %v3462_v40 }
 0x131   :  { %2964 = vmatprep.subr.bf16.mxu0 %v3463_v41  ;;  %2986 = vmatprep.subr.bf16.mxu1 %v3464_v42  ;;  %v2910_v41 = vld [vmem:[%s3778_s5] ss:$0 sm:$0xff] }
 0x134   :  { %2965 = vmatpush3.bf16.msra.mxu0 %v3465_v43  ;;  %2987 = vmatpush3.bf16.msra.mxu1 %v3466_v44 }
 0x135   :  { %2966 = vmatprep.subr.bf16.mxu0 %v3467_v46  ;;  %2988 = vmatprep.subr.bf16.mxu1 %v3468_v47 }
 0x138   :  { %2967 = vmatpush3.bf16.msra.mxu0 %v3469_v48  ;;  %2989 = vmatpush3.bf16.msra.mxu1 %v3470_v49 }
 0x139   :  { %2968 = vmatprep.subr.bf16.mxu0 %v3471_v50  ;;  %2990 = vmatprep.subr.bf16.mxu1 %v3472_v51 }
 0x13c   :  { %2969 = vmatpush3.bf16.msra.mxu0 %v3473_v52  ;;  %2991 = vmatpush3.bf16.msra.mxu1 %v3474_v53 }
 0x13d   :  { %2970 = vmatprep.subr.bf16.mxu0 %v3475_v54  ;;  %2992 = vmatprep.subr.bf16.mxu1 %v3476_v15 }
 0x140   :  { %2971 = vmatpush3.bf16.msra.mxu0 %v3477_v55  ;;  %2993 = vmatpush3.bf16.msra.mxu1 %v3478_v16 }
 0x141   :  { %3009 = vmatprep.subr.bf16.mxu0 %v3558_v32 }
 0x1f6   :  { %v1954_v2 = vpop.f32.mrb[0].mxu0  ;;  %v2126_v3 = vpop.f32.mrb[0].mxu1 }
 0x1f7   :  { %v3029_v4 = vadd.f32 %v1954_v2, %v468_v62  ;;  %v3033_v5 = vadd.f32 %v2126_v3, %v476_v63  ;;  %v1956_v6 = vpop.f32.mrb[1].mxu0  ;;  %v2128_v7 = vpop.f32.mrb[1].mxu1  ;;  %v2945_v2 = vld [vmem:[%s3780_s7] ss:$0 sm:$0xff] }
 0x1f8   :  { %v3030_v8 = vadd.f32 %v1956_v6, %v472_v0  ;;  %v3034_v9 = vadd.f32 %v2128_v7, %v480_v1  ;;  %v1958_v10 = vpop.f32.mrb[2].mxu0  ;;  %v2130_v11 = vpop.f32.mrb[2].mxu1 }
 0x1f9   :  { %v3031_v12 = vadd.f32 %v1958_v10, %v468_v62  ;;  %v3035_v13 = vadd.f32 %v2130_v11, %v476_v63  ;;  %v1960_v18 = vpop.f32.mrb[3].mxu0  ;;  %v2132_v19 = vpop.f32.mrb[3].mxu1  ;;  %v2135_v61 = vmax.f32 %v3029_v4, 0.0  ;;  %v2137_v31 = vmax.f32 %v3033_v5, 0.0 }
 0x1fa   :  { %v3032_v45 = vadd.f32 %v1960_v18, %v472_v0  ;;  %v3036_v20 = vadd.f32 %v2132_v19, %v480_v1  ;;  %v2136_v56 = vmax.f32 %v3030_v8, 0.0  ;;  %v2138_v25 = vmax.f32 %v3034_v9, 0.0 }
 0x1fb   :  { %v2139_v23 = vmax.f32 %v3031_v12, 0.0  ;;  %v2141_v24 = vmax.f32 %v3035_v13, 0.0  ;;  %v2618_v19 = vand.u32 127, %v72_v39 }
 0x1fc   :  { %v2140_v26 = vmax.f32 %v3032_v45, 0.0  ;;  %v2142_v27 = vmax.f32 %v3036_v20, 0.0 }
 0x1fd   :  { %v2143_v28 = vpack.c.bf16 %v2139_v23, %v2135_v61  ;;  %v2145_v29 = vpack.c.bf16 %v2141_v24, %v2137_v31  ;;  %vm2619_vm3 = vcmp.lt.s32.totalorder %v2618_v19, 2 }
 0x1fe   :  { %v2144_v30 = vpack.c.bf16 %v2140_v26, %v2136_v56  ;;  %v2146_v14 = vpack.c.bf16 %v2142_v27, %v2138_v25 }
 0x200   :  { %2442 = vmatprep.mubr.bf16.mxu0 %v2144_v30  ;;  %2483 = vmatprep.mubr.bf16.mxu1 %v2146_v14 }
 0x201   :  { %2443 = vmatmul.mubr.bf16.vlgmr.msra.gmra.mrb[4].mxu0 %v2143_v28  ;;  %2484 = vmatmul.mubr.bf16.vlgmr.msra.gmra.mrb[4].mxu1 %v2145_v29 }
 0x202   :  { %3010 = vmatpush3.bf16.msra.mxu0 %v3479_v17  ;;  %3025 = vmatprep.mubr.msk.bf16.mxu0 %vm3559_vm2, %v3558_v32 }
 0x203   :  { %3011 = vmatprep.subr.bf16.mxu0 %v3558_v32 }
 0x206   :  { %3012 = vmatpush3.bf16.msra.mxu0 %v3480_v33 }
 0x207   :  { %3013 = vmatprep.subr.bf16.mxu0 %v3558_v32 }
 0x20a   :  { %3014 = vmatpush3.bf16.msra.mxu0 %v3481_v34 }
 0x20b   :  { %3015 = vmatprep.subr.bf16.mxu0 %v3558_v32 }
 0x20e   :  { %3016 = vmatpush3.bf16.msra.mxu0 %v3482_v35 }
 0x20f   :  { %3017 = vmatprep.subr.bf16.mxu0 %v3558_v32 }
 0x212   :  { %3018 = vmatpush3.bf16.msra.mxu0 %v3483_v21 }
 0x213   :  { %3019 = vmatprep.subr.bf16.mxu0 %v3558_v32 }
 0x216   :  { %3020 = vmatpush3.bf16.msra.mxu0 %v3484_v22 }
 0x217   :  { %3021 = vmatprep.subr.bf16.mxu0 %v3558_v32 }
 0x21a   :  { %3022 = vmatpush3.bf16.msra.mxu0 %v3485_v36 }
 0x21b   :  { %3023 = vmatprep.subr.bf16.mxu0 %v3558_v32 }
 0x21e   :  { %3024 = vmatpush3.bf16.msra.mxu0 %v3486_v37 }
 0x2d4   :  { %v2972_v38 = vpop.f32.mrb[4].mxu0  ;;  %v2994_v40 = vpop.f32.mrb[4].mxu1 }
 0x2d5   :  { %v2973_v42 = vpop.f32.mrb[5].mxu0  ;;  %v2995_v43 = vpop.f32.mrb[5].mxu1 }
 0x2d6   :  { %v2974_v44 = vadd.f32 %v2973_v42, %v2972_v38  ;;  %v2996_v46 = vadd.f32 %v2995_v43, %v2994_v40  ;;  %v2975_v47 = vpop.f32.mrb[6].mxu0  ;;  %v2997_v48 = vpop.f32.mrb[6].mxu1 }
 0x2d7   :  { %v2976_v49 = vpop.f32.mrb[7].mxu0  ;;  %v2998_v50 = vpop.f32.mrb[7].mxu1 }
 0x2d8   :  { %v2445_v51 = vadd.f32 %v2974_v44, %v2910_v41  ;;  %v2977_v52 = vadd.f32 %v2976_v49, %v2975_v47  ;;  %v2999_v53 = vadd.f32 %v2998_v50, %v2997_v48 }
 0x2da   :  { %v2486_v54 = vadd.f32 %v2996_v46, %v2445_v51  ;;  %v2448_v15 = vadd.f32 %v2977_v52, %v2910_v41 }
 0x2dc   :  { %v2943_v55 = vmul.f32 -1.442695, %v2486_v54  ;;  %v2489_v16 = vadd.f32 %v2999_v53, %v2448_v15 }
 0x2de   :  { %3487 = vpow2.f32 %v2943_v55  ;;  %v2944_v57 = vmul.f32 -1.442695, %v2489_v16 }
 0x2e0   :  { %3489 = vpow2.f32 %v2944_v57 }
 0x2e8   :  { %v3488_v58 = vpop.eup %3487 }
 0x2e9   :  { %v2498_v59 = vadd.f32 1.0, %v3488_v58 }
 0x2ea   :  { %v3490_v60 = vpop.eup %3489 }
 0x2eb   :  { %v2499_v62 = vadd.f32 1.0, %v3490_v60  ;;  %3491 = vrcp.f32 %v2498_v59 }
 0x2ed   :  { %3493 = vrcp.f32 %v2499_v62 }
 0x2f5   :  { %v3492_v63 = vpop.eup %3491 }
 0x2f7   :  { %v3494_v0 = vpop.eup %3493 }
 0x2f8   :  { %v2504_v1 = vpack.c.bf16 %v3494_v0, %v3492_v63 }
 0x2fa   :  { %3026 = vmatmul.mubr.bf16.vlgmr.msra.gmra.mrb[8].mxu0 %v2504_v1 }
 0x3cd   :  { %v2610_v3 = vpop.f32.mrb[8].mxu0 }
 0x3ce   :  { %v2611_v4 = vadd.f32 %v2945_v2, %v2610_v3  ;;  %v3027_v5 = vpop.f32.mrb[9].mxu0 }
 0x3cf   :  { %v2613_v6 = vpop.f32.mrb[10].mxu0 }
 0x3d0   :  { %v2954_v7 = vmul.f32 -1.442695, %v2611_v4  ;;  %v2614_v8 = vadd.f32 %v2945_v2, %v2613_v6  ;;  %v3028_v9 = vpop.f32.mrb[11].mxu0 }
 0x3d2   :  { %3495 = vpow2.f32 %v2954_v7  ;;  %v2955_v10 = vmul.f32 -1.442695, %v2614_v8 }
 0x3d4   :  { %3497 = vpow2.f32 %v2955_v10 }
 0x3dc   :  { %v3496_v11 = vpop.eup %3495 }
 0x3dd   :  { %v2626_v12 = vadd.f32 1.0, %v3496_v11 }
 0x3de   :  { %v3498_v13 = vpop.eup %3497 }
 0x3df   :  { %3499 = vrcp.f32 %v2626_v12  ;;  %v2627_v18 = vadd.f32 1.0, %v3498_v13 }
 0x3e1   :  { %3501 = vrcp.f32 %v2627_v18 }
 0x3e9   :  { %v3500_v45 = vpop.eup %3499 }
 0x3ea   :  { %v2632_v20 = vsel %vm2619_vm3, %v3500_v45, %v2611_v4 }
 0x3eb   :  { %v3502_v61 = vpop.eup %3501  ;;  %2634 = vst [vmem:[%s3781_s8] sm:$0xff] %v2632_v20 }
 0x3ec   :  { %v2633_v31 = vsel %vm2619_vm3, %v3502_v61, %v2614_v8 }
 0x3ed   :  { %2635 = vst [vmem:[%s3781_s8 + $0x8] sm:$0xff] %v2633_v31 }
 0x3ee   :  { %2640 = vsyncpa [#allocation3], 1 }
 0x3ef   :  { %2641 = vsyncpa [#allocation5], 1 }

</bundles_post_ra>
